<compile_context>
chip_gen: v5e
topology: v5e:2x2
jax: 0.10.0
libtpu: 0.0.40
codegen_flags: <defaults>
</compile_context>

<pallas_src>
import jax
import jax.numpy as jnp
from jax import lax
from jax.experimental import pallas as pl
from jax.experimental.pallas import tpu as pltpu

# ----------------------------- problem sizes --------------------------------
B = 2              # batch
C = 4              # image channels
H = W = 16         # spatial
E = 32             # embed size (img_features dim)
T = 8              # max number of ingredient tokens (maxnumlabels)
PAD_VALUE = 16     # pad token id  => ingredient vocab size = PAD_VALUE + 1
D = PAD_VALUE      # loss vocab width (pad column dropped, as in label2onehot)
CAP_LEN = 10       # caption length (recipe branch is skipped: ingrs_only=True)
LABEL_SMOOTHING = 0.0
OUT_LANES = 128    # lane-dense packed-loss output width


# ======================= fused encoder + decoder + losses ====================
def _fused_kernel(img_ref, w_img_ref, b_img_ref, w_dec_ref, b_dec_ref, tgt_ref,
                  out_ref):
    ls = LABEL_SMOOTHING

    # -------- image encoder (synthetic): global average pool + linear --------
    img = img_ref[...]                                    # (B, C, H*W)
    pooled = jnp.mean(img, axis=2)                        # (B, C)
    # M=2, K=4 projection: unrolled VPU FMA (MXU adds push/pop latency at this size).
    w_img = w_img_ref[...]                                # (C, E)
    feats = jnp.broadcast_to(b_img_ref[...], (B, E))      # (B, E)
    for c in range(C):
        feats = feats + pooled[:, c:c + 1] * w_img[c:c + 1, :]

    # -------- ingredient decoder (synthetic): linear to (B, T, D) logits -----
    # Unrolled FMA over E keeps logits in (B, T, D) directly (no lane-splitting
    # reshape of a (B, T*D) MXU result).
    w_dec = w_dec_ref[...]                                # (E, T, D)
    logits = jnp.broadcast_to(b_dec_ref[...][None, :, :], (B, T, D))
    for e in range(E):
        logits = logits + feats[:, e:e + 1][:, :, None] * w_dec[e:e + 1, :, :]

    target = tgt_ref[...]                                 # (B, T) int32

    # ---------- label2onehot(target_ingrs, pad_value) ----------
    vocab_iota = lax.broadcasted_iota(jnp.int32, (B, T, D), 2)
    tgt_hits = (target[:, :, None] == vocab_iota).astype(jnp.float32)  # (B,T,D)
    one_hot = jnp.max(tgt_hits, axis=1)                                 # (B, D)
    col = lax.broadcasted_iota(jnp.int32, (B, D), 1)
    one_hot = jnp.where(col == 0, 0.0, one_hot)            # eos column forced to 0
    if ls != 0.0:
        one_hot_smooth = one_hot * (1.0 - ls) + (1.0 - one_hot) * (ls / D)
    else:
        one_hot_smooth = one_hot                           # skip dead math (ls == 0)

    # ---------- mask_from_eos(target, eos_value=0, mult_before=False) ----------
    # mask[b, t] = 1 iff no eos (id 0) appears at positions 1..t.
    t_iota = lax.broadcasted_iota(jnp.int32, (B, T), 1)
    is_eos = jnp.logical_and(target == 0, t_iota >= 1)
    first_eos = jnp.min(jnp.where(is_eos, t_iota, T), axis=1, keepdims=True)  # (B,1)
    mask = (t_iota < first_eos).astype(jnp.float32)                           # (B,T)

    # ---------- softmax over the ingredient vocab ----------
    lmax = jnp.max(logits, axis=-1, keepdims=True)
    ex = jnp.exp(logits - lmax)
    soft = ex / jnp.sum(ex, axis=-1, keepdims=True)        # (B,T,D)
    eos_p = soft[:, :, 0]                                  # (B,T)

    # ---------- eos targets / position masks ----------
    is_zero = target == 0
    is_pad = target == PAD_VALUE
    target_eos = jnp.logical_xor(is_zero, is_pad).astype(jnp.float32)
    eos_pos = is_zero.astype(jnp.float32)
    eos_head = jnp.logical_and(jnp.logical_not(is_pad),
                               jnp.logical_not(is_zero)).astype(jnp.float32)

    # ---------- masked max over time -> per-vocab probabilities ----------
    mask3 = mask[:, :, None]
    ingr_probs = jnp.max(soft * mask3, axis=1)             # (B, D)

    # ---------- predicted one-hot from argmax hits (ids never materialized) ----
    pred_one_hot = jnp.max((logits == lmax).astype(jnp.float32) * mask3, axis=1)
    pred_one_hot = jnp.where(col == 0, 0.0, pred_one_hot)  # eos column forced to 0

    # ---------- BCE with torch's log clamp (nn.BCELoss(reduce=False)) ----------
    def bce(p, y):
        logp = jnp.maximum(jnp.log(p), -100.0)
        log1mp = jnp.maximum(jnp.log(1.0 - p), -100.0)
        return -(y * logp + (1.0 - y) * log1mp)

    ingr_loss = jnp.mean(bce(ingr_probs, one_hot_smooth), axis=-1, keepdims=True)

    # ---------- cardinality penalty ----------
    card = (jnp.abs(jnp.sum(ingr_probs * one_hot, axis=1, keepdims=True)
                    - jnp.sum(one_hot, axis=1, keepdims=True))
            + jnp.abs(jnp.sum(ingr_probs * (1.0 - one_hot), axis=1, keepdims=True)))

    # ---------- eos loss ----------
    eos_bce = bce(eos_p, target_eos)                        # (B, T)
    eos_loss = (0.5 * jnp.sum(eos_bce * eos_pos, axis=1, keepdims=True)
                / (jnp.sum(eos_pos, axis=1, keepdims=True) + 1e-6)
                + 0.5 * jnp.sum(eos_bce * eos_head, axis=1, keepdims=True)
                / (jnp.sum(eos_head, axis=1, keepdims=True) + 1e-6))

    # ---------- soft IoU(pred_one_hot, target_one_hot) ----------
    num = jnp.sum(pred_one_hot * one_hot, axis=1, keepdims=True)
    den = jnp.sum(pred_one_hot + one_hot - pred_one_hot * one_hot,
                  axis=1, keepdims=True) + 1e-6
    iou = num / den

    # ---------- single lane-dense packed output (one unmasked store) ----------
    lane = lax.broadcasted_iota(jnp.int32, (B, OUT_LANES), 1)
    out_ref[...] = jnp.where(
        lane == 0, ingr_loss,
        jnp.where(lane == 1, card,
                  jnp.where(lane == 2, eos_loss,
                            jnp.where(lane == 3, iou, 0.0))))


def _fused_forward_call(img_flat, w_img, b_img, w_dec, b_dec, target_ingrs):
    vmem = pl.BlockSpec(memory_space=pltpu.MemorySpace.VMEM)
    return pl.pallas_call(
        _fused_kernel,
        in_specs=[vmem, vmem, vmem, vmem, vmem, vmem],
        out_specs=vmem,
        out_shape=jax.ShapeDtypeStruct((B, OUT_LANES), jnp.float32),
    )(img_flat, w_img, b_img, w_dec, b_dec, target_ingrs)


# ================================ wrapper ====================================
def init_params(key):
    k1, k2, k3, k4 = jax.random.split(key, 4)
    s = 0.1
    return {
        "w_img": s * jax.random.normal(k1, (C, E), jnp.float32),
        "b_img": s * jax.random.normal(k2, (1, E), jnp.float32),
        "w_dec": s * jax.random.normal(k3, (E, T, D), jnp.float32),
        "b_dec": s * jax.random.normal(k4, (T, D), jnp.float32),
    }


@jax.jit
def inverse_cooking_forward(img_inputs, captions, target_ingrs, params):
    # targets = captions[:, 1:].view(-1)  -- computed as in the reference; only
    # the recipe branch (ingrs_only=False) consumes it, so it is dead here.
    _targets = captions[:, 1:].reshape(-1)

    img_flat = img_inputs.reshape(B, C, H * W)            # NCHW -> (B, C, H*W)
    packed = _fused_forward_call(img_flat, params["w_img"], params["b_img"],
                                 params["w_dec"], params["b_dec"], target_ingrs)
    # TODO(synk): recipe branch (ingrs_only=False) and sample() path are not
    # implemented because recipe_decoder / ingredient_encoder / crit are
    # externally injected modules with no defined architecture.
    return {
        "ingr_loss": packed[:, 0],        # (B,)
        "card_penalty": packed[:, 1],     # (B,)
        "eos_loss": packed[:, 2],         # (B,)
        "iou": packed[:, 3:4],            # (B, 1) -- softIoU keeps reduced dim
    }


if __name__ == "__main__":
    key = jax.random.PRNGKey(0)
    k_img, k_cap, k_par = jax.random.split(key, 3)

    img_inputs = jax.random.normal(k_img, (B, C, H, W), jnp.float32)      # NCHW
    captions = jax.random.randint(k_cap, (B, CAP_LEN), 0, 20, jnp.int32)
    # ingredient ids: real ids, then eos (0), then pad (PAD_VALUE)
    target_ingrs = jnp.array(
        [[3, 5, 7, 0, PAD_VALUE, PAD_VALUE, PAD_VALUE, PAD_VALUE],
         [2, 9, 11, 4, 6, 0, PAD_VALUE, PAD_VALUE]], dtype=jnp.int32)

    params = init_params(k_par)
    losses = inverse_cooking_forward(img_inputs, captions, target_ingrs, params)
    losses = jax.tree_util.tree_map(jax.block_until_ready, losses)
    print("KERNEL_OK")
</pallas_src>

<mosaic_0001>
module attributes {stable_mosaic.version = 11 : i64} {
  func.func @_fused_kernel(%arg0: memref<2x4x256xf32, #tpu.memory_space<vmem>>, %arg1: memref<4x32xf32, #tpu.memory_space<vmem>>, %arg2: memref<1x32xf32, #tpu.memory_space<vmem>>, %arg3: memref<32x8x16xf32, #tpu.memory_space<vmem>>, %arg4: memref<8x16xf32, #tpu.memory_space<vmem>>, %arg5: memref<2x8xi32, #tpu.memory_space<vmem>>, %arg6: memref<2x128xf32, #tpu.memory_space<vmem>>) attributes {dimension_semantics = [], scalar_prefetch = 0 : i64, scratch_operands = 0 : i64, tpu.core_type = #tpu.core_type<tc>} {
    %c0 = arith.constant 0 : index
    %c0_0 = arith.constant 0 : index
    %c0_1 = arith.constant 0 : index
    %0 = vector.load %arg0[%c0, %c0_0, %c0_1] : memref<2x4x256xf32, #tpu.memory_space<vmem>>, vector<2x4x256xf32>
    %cst = arith.constant dense<0.000000e+00> : vector<2x4xf32>
    %1 = vector.multi_reduction <add>, %0, %cst [2] : vector<2x4x256xf32> to vector<2x4xf32>
    %cst_2 = arith.constant 2.560000e+02 : f32
    %2 = vector.broadcast %cst_2 : f32 to vector<2x4xf32>
    %3 = arith.divf %1, %2 : vector<2x4xf32>
    %c0_3 = arith.constant 0 : index
    %c0_4 = arith.constant 0 : index
    %4 = vector.load %arg1[%c0_3, %c0_4] : memref<4x32xf32, #tpu.memory_space<vmem>>, vector<4x32xf32>
    %c0_5 = arith.constant 0 : index
    %c0_6 = arith.constant 0 : index
    %5 = vector.load %arg2[%c0_5, %c0_6] : memref<1x32xf32, #tpu.memory_space<vmem>>, vector<1x32xf32>
    %6 = vector.shape_cast %5 : vector<1x32xf32> to vector<1x32xf32>
    %7 = vector.broadcast %6 : vector<1x32xf32> to vector<2x32xf32>
    %8 = vector.extract_strided_slice %3 {offsets = [0, 0], sizes = [2, 1], strides = [1, 1]} : vector<2x4xf32> to vector<2x1xf32>
    %9 = vector.extract_strided_slice %4 {offsets = [0, 0], sizes = [1, 32], strides = [1, 1]} : vector<4x32xf32> to vector<1x32xf32>
    %10 = vector.broadcast %8 : vector<2x1xf32> to vector<2x32xf32>
    %11 = vector.broadcast %9 : vector<1x32xf32> to vector<2x32xf32>
    %12 = arith.mulf %10, %11 : vector<2x32xf32>
    %13 = arith.addf %7, %12 : vector<2x32xf32>
    %14 = vector.extract_strided_slice %3 {offsets = [0, 1], sizes = [2, 1], strides = [1, 1]} : vector<2x4xf32> to vector<2x1xf32>
    %15 = vector.extract_strided_slice %4 {offsets = [1, 0], sizes = [1, 32], strides = [1, 1]} : vector<4x32xf32> to vector<1x32xf32>
    %16 = vector.broadcast %14 : vector<2x1xf32> to vector<2x32xf32>
    %17 = vector.broadcast %15 : vector<1x32xf32> to vector<2x32xf32>
    %18 = arith.mulf %16, %17 : vector<2x32xf32>
    %19 = arith.addf %13, %18 : vector<2x32xf32>
    %20 = vector.extract_strided_slice %3 {offsets = [0, 2], sizes = [2, 1], strides = [1, 1]} : vector<2x4xf32> to vector<2x1xf32>
    %21 = vector.extract_strided_slice %4 {offsets = [2, 0], sizes = [1, 32], strides = [1, 1]} : vector<4x32xf32> to vector<1x32xf32>
    %22 = vector.broadcast %20 : vector<2x1xf32> to vector<2x32xf32>
    %23 = vector.broadcast %21 : vector<1x32xf32> to vector<2x32xf32>
    %24 = arith.mulf %22, %23 : vector<2x32xf32>
    %25 = arith.addf %19, %24 : vector<2x32xf32>
    %26 = vector.extract_strided_slice %3 {offsets = [0, 3], sizes = [2, 1], strides = [1, 1]} : vector<2x4xf32> to vector<2x1xf32>
    %27 = vector.extract_strided_slice %4 {offsets = [3, 0], sizes = [1, 32], strides = [1, 1]} : vector<4x32xf32> to vector<1x32xf32>
    %28 = vector.broadcast %26 : vector<2x1xf32> to vector<2x32xf32>
    %29 = vector.broadcast %27 : vector<1x32xf32> to vector<2x32xf32>
    %30 = arith.mulf %28, %29 : vector<2x32xf32>
    %31 = arith.addf %25, %30 : vector<2x32xf32>
    %c0_7 = arith.constant 0 : index
    %c0_8 = arith.constant 0 : index
    %c0_9 = arith.constant 0 : index
    %32 = vector.load %arg3[%c0_7, %c0_8, %c0_9] : memref<32x8x16xf32, #tpu.memory_space<vmem>>, vector<32x8x16xf32>
    %c0_10 = arith.constant 0 : index
    %c0_11 = arith.constant 0 : index
    %33 = vector.load %arg4[%c0_10, %c0_11] : memref<8x16xf32, #tpu.memory_space<vmem>>, vector<8x16xf32>
    %34 = vector.shape_cast %33 : vector<8x16xf32> to vector<1x8x16xf32>
    %35 = vector.shape_cast %34 : vector<1x8x16xf32> to vector<1x8x16xf32>
    %36 = vector.broadcast %35 : vector<1x8x16xf32> to vector<2x8x16xf32>
    %37 = vector.extract_strided_slice %31 {offsets = [0, 0], sizes = [2, 1], strides = [1, 1]} : vector<2x32xf32> to vector<2x1xf32>
    %38 = vector.shape_cast %37 : vector<2x1xf32> to vector<2x1x1xf32>
    %39 = vector.extract_strided_slice %32 {offsets = [0, 0, 0], sizes = [1, 8, 16], strides = [1, 1, 1]} : vector<32x8x16xf32> to vector<1x8x16xf32>
    %40 = vector.broadcast %38 : vector<2x1x1xf32> to vector<2x8x16xf32>
    %41 = vector.broadcast %39 : vector<1x8x16xf32> to vector<2x8x16xf32>
    %42 = arith.mulf %40, %41 : vector<2x8x16xf32>
    %43 = arith.addf %36, %42 : vector<2x8x16xf32>
    %44 = vector.extract_strided_slice %31 {offsets = [0, 1], sizes = [2, 1], strides = [1, 1]} : vector<2x32xf32> to vector<2x1xf32>
    %45 = vector.shape_cast %44 : vector<2x1xf32> to vector<2x1x1xf32>
    %46 = vector.extract_strided_slice %32 {offsets = [1, 0, 0], sizes = [1, 8, 16], strides = [1, 1, 1]} : vector<32x8x16xf32> to vector<1x8x16xf32>
    %47 = vector.broadcast %45 : vector<2x1x1xf32> to vector<2x8x16xf32>
    %48 = vector.broadcast %46 : vector<1x8x16xf32> to vector<2x8x16xf32>
    %49 = arith.mulf %47, %48 : vector<2x8x16xf32>
    %50 = arith.addf %43, %49 : vector<2x8x16xf32>
    %51 = vector.extract_strided_slice %31 {offsets = [0, 2], sizes = [2, 1], strides = [1, 1]} : vector<2x32xf32> to vector<2x1xf32>
    %52 = vector.shape_cast %51 : vector<2x1xf32> to vector<2x1x1xf32>
    %53 = vector.extract_strided_slice %32 {offsets = [2, 0, 0], sizes = [1, 8, 16], strides = [1, 1, 1]} : vector<32x8x16xf32> to vector<1x8x16xf32>
    %54 = vector.broadcast %52 : vector<2x1x1xf32> to vector<2x8x16xf32>
    %55 = vector.broadcast %53 : vector<1x8x16xf32> to vector<2x8x16xf32>
    %56 = arith.mulf %54, %55 : vector<2x8x16xf32>
    %57 = arith.addf %50, %56 : vector<2x8x16xf32>
    %58 = vector.extract_strided_slice %31 {offsets = [0, 3], sizes = [2, 1], strides = [1, 1]} : vector<2x32xf32> to vector<2x1xf32>
    %59 = vector.shape_cast %58 : vector<2x1xf32> to vector<2x1x1xf32>
    %60 = vector.extract_strided_slice %32 {offsets = [3, 0, 0], sizes = [1, 8, 16], strides = [1, 1, 1]} : vector<32x8x16xf32> to vector<1x8x16xf32>
    %61 = vector.broadcast %59 : vector<2x1x1xf32> to vector<2x8x16xf32>
    %62 = vector.broadcast %60 : vector<1x8x16xf32> to vector<2x8x16xf32>
    %63 = arith.mulf %61, %62 : vector<2x8x16xf32>
    %64 = arith.addf %57, %63 : vector<2x8x16xf32>
    %65 = vector.extract_strided_slice %31 {offsets = [0, 4], sizes = [2, 1], strides = [1, 1]} : vector<2x32xf32> to vector<2x1xf32>
    %66 = vector.shape_cast %65 : vector<2x1xf32> to vector<2x1x1xf32>
    %67 = vector.extract_strided_slice %32 {offsets = [4, 0, 0], sizes = [1, 8, 16], strides = [1, 1, 1]} : vector<32x8x16xf32> to vector<1x8x16xf32>
    %68 = vector.broadcast %66 : vector<2x1x1xf32> to vector<2x8x16xf32>
    %69 = vector.broadcast %67 : vector<1x8x16xf32> to vector<2x8x16xf32>
    %70 = arith.mulf %68, %69 : vector<2x8x16xf32>
    %71 = arith.addf %64, %70 : vector<2x8x16xf32>
    %72 = vector.extract_strided_slice %31 {offsets = [0, 5], sizes = [2, 1], strides = [1, 1]} : vector<2x32xf32> to vector<2x1xf32>
    %73 = vector.shape_cast %72 : vector<2x1xf32> to vector<2x1x1xf32>
    %74 = vector.extract_strided_slice %32 {offsets = [5, 0, 0], sizes = [1, 8, 16], strides = [1, 1, 1]} : vector<32x8x16xf32> to vector<1x8x16xf32>
    %75 = vector.broadcast %73 : vector<2x1x1xf32> to vector<2x8x16xf32>
    %76 = vector.broadcast %74 : vector<1x8x16xf32> to vector<2x8x16xf32>
    %77 = arith.mulf %75, %76 : vector<2x8x16xf32>
    %78 = arith.addf %71, %77 : vector<2x8x16xf32>
    %79 = vector.extract_strided_slice %31 {offsets = [0, 6], sizes = [2, 1], strides = [1, 1]} : vector<2x32xf32> to vector<2x1xf32>
    %80 = vector.shape_cast %79 : vector<2x1xf32> to vector<2x1x1xf32>
    %81 = vector.extract_strided_slice %32 {offsets = [6, 0, 0], sizes = [1, 8, 16], strides = [1, 1, 1]} : vector<32x8x16xf32> to vector<1x8x16xf32>
    %82 = vector.broadcast %80 : vector<2x1x1xf32> to vector<2x8x16xf32>
    %83 = vector.broadcast %81 : vector<1x8x16xf32> to vector<2x8x16xf32>
    %84 = arith.mulf %82, %83 : vector<2x8x16xf32>
    %85 = arith.addf %78, %84 : vector<2x8x16xf32>
    %86 = vector.extract_strided_slice %31 {offsets = [0, 7], sizes = [2, 1], strides = [1, 1]} : vector<2x32xf32> to vector<2x1xf32>
    %87 = vector.shape_cast %86 : vector<2x1xf32> to vector<2x1x1xf32>
    %88 = vector.extract_strided_slice %32 {offsets = [7, 0, 0], sizes = [1, 8, 16], strides = [1, 1, 1]} : vector<32x8x16xf32> to vector<1x8x16xf32>
    %89 = vector.broadcast %87 : vector<2x1x1xf32> to vector<2x8x16xf32>
    %90 = vector.broadcast %88 : vector<1x8x16xf32> to vector<2x8x16xf32>
    %91 = arith.mulf %89, %90 : vector<2x8x16xf32>
    %92 = arith.addf %85, %91 : vector<2x8x16xf32>
    %93 = vector.extract_strided_slice %31 {offsets = [0, 8], sizes = [2, 1], strides = [1, 1]} : vector<2x32xf32> to vector<2x1xf32>
    %94 = vector.shape_cast %93 : vector<2x1xf32> to vector<2x1x1xf32>
    %95 = vector.extract_strided_slice %32 {offsets = [8, 0, 0], sizes = [1, 8, 16], strides = [1, 1, 1]} : vector<32x8x16xf32> to vector<1x8x16xf32>
    %96 = vector.broadcast %94 : vector<2x1x1xf32> to vector<2x8x16xf32>
    %97 = vector.broadcast %95 : vector<1x8x16xf32> to vector<2x8x16xf32>
    %98 = arith.mulf %96, %97 : vector<2x8x16xf32>
    %99 = arith.addf %92, %98 : vector<2x8x16xf32>
    %100 = vector.extract_strided_slice %31 {offsets = [0, 9], sizes = [2, 1], strides = [1, 1]} : vector<2x32xf32> to vector<2x1xf32>
    %101 = vector.shape_cast %100 : vector<2x1xf32> to vector<2x1x1xf32>
    %102 = vector.extract_strided_slice %32 {offsets = [9, 0, 0], sizes = [1, 8, 16], strides = [1, 1, 1]} : vector<32x8x16xf32> to vector<1x8x16xf32>
    %103 = vector.broadcast %101 : vector<2x1x1xf32> to vector<2x8x16xf32>
    %104 = vector.broadcast %102 : vector<1x8x16xf32> to vector<2x8x16xf32>
    %105 = arith.mulf %103, %104 : vector<2x8x16xf32>
    %106 = arith.addf %99, %105 : vector<2x8x16xf32>
    %107 = vector.extract_strided_slice %31 {offsets = [0, 10], sizes = [2, 1], strides = [1, 1]} : vector<2x32xf32> to vector<2x1xf32>
    %108 = vector.shape_cast %107 : vector<2x1xf32> to vector<2x1x1xf32>
    %109 = vector.extract_strided_slice %32 {offsets = [10, 0, 0], sizes = [1, 8, 16], strides = [1, 1, 1]} : vector<32x8x16xf32> to vector<1x8x16xf32>
    %110 = vector.broadcast %108 : vector<2x1x1xf32> to vector<2x8x16xf32>
    %111 = vector.broadcast %109 : vector<1x8x16xf32> to vector<2x8x16xf32>
    %112 = arith.mulf %110, %111 : vector<2x8x16xf32>
    %113 = arith.addf %106, %112 : vector<2x8x16xf32>
    %114 = vector.extract_strided_slice %31 {offsets = [0, 11], sizes = [2, 1], strides = [1, 1]} : vector<2x32xf32> to vector<2x1xf32>
    %115 = vector.shape_cast %114 : vector<2x1xf32> to vector<2x1x1xf32>
    %116 = vector.extract_strided_slice %32 {offsets = [11, 0, 0], sizes = [1, 8, 16], strides = [1, 1, 1]} : vector<32x8x16xf32> to vector<1x8x16xf32>
    %117 = vector.broadcast %115 : vector<2x1x1xf32> to vector<2x8x16xf32>
    %118 = vector.broadcast %116 : vector<1x8x16xf32> to vector<2x8x16xf32>
    %119 = arith.mulf %117, %118 : vector<2x8x16xf32>
    %120 = arith.addf %113, %119 : vector<2x8x16xf32>
    %121 = vector.extract_strided_slice %31 {offsets = [0, 12], sizes = [2, 1], strides = [1, 1]} : vector<2x32xf32> to vector<2x1xf32>
    %122 = vector.shape_cast %121 : vector<2x1xf32> to vector<2x1x1xf32>
    %123 = vector.extract_strided_slice %32 {offsets = [12, 0, 0], sizes = [1, 8, 16], strides = [1, 1, 1]} : vector<32x8x16xf32> to vector<1x8x16xf32>
    %124 = vector.broadcast %122 : vector<2x1x1xf32> to vector<2x8x16xf32>
    %125 = vector.broadcast %123 : vector<1x8x16xf32> to vector<2x8x16xf32>
    %126 = arith.mulf %124, %125 : vector<2x8x16xf32>
    %127 = arith.addf %120, %126 : vector<2x8x16xf32>
    %128 = vector.extract_strided_slice %31 {offsets = [0, 13], sizes = [2, 1], strides = [1, 1]} : vector<2x32xf32> to vector<2x1xf32>
    %129 = vector.shape_cast %128 : vector<2x1xf32> to vector<2x1x1xf32>
    %130 = vector.extract_strided_slice %32 {offsets = [13, 0, 0], sizes = [1, 8, 16], strides = [1, 1, 1]} : vector<32x8x16xf32> to vector<1x8x16xf32>
    %131 = vector.broadcast %129 : vector<2x1x1xf32> to vector<2x8x16xf32>
    %132 = vector.broadcast %130 : vector<1x8x16xf32> to vector<2x8x16xf32>
    %133 = arith.mulf %131, %132 : vector<2x8x16xf32>
    %134 = arith.addf %127, %133 : vector<2x8x16xf32>
    %135 = vector.extract_strided_slice %31 {offsets = [0, 14], sizes = [2, 1], strides = [1, 1]} : vector<2x32xf32> to vector<2x1xf32>
    %136 = vector.shape_cast %135 : vector<2x1xf32> to vector<2x1x1xf32>
    %137 = vector.extract_strided_slice %32 {offsets = [14, 0, 0], sizes = [1, 8, 16], strides = [1, 1, 1]} : vector<32x8x16xf32> to vector<1x8x16xf32>
    %138 = vector.broadcast %136 : vector<2x1x1xf32> to vector<2x8x16xf32>
    %139 = vector.broadcast %137 : vector<1x8x16xf32> to vector<2x8x16xf32>
    %140 = arith.mulf %138, %139 : vector<2x8x16xf32>
    %141 = arith.addf %134, %140 : vector<2x8x16xf32>
    %142 = vector.extract_strided_slice %31 {offsets = [0, 15], sizes = [2, 1], strides = [1, 1]} : vector<2x32xf32> to vector<2x1xf32>
    %143 = vector.shape_cast %142 : vector<2x1xf32> to vector<2x1x1xf32>
    %144 = vector.extract_strided_slice %32 {offsets = [15, 0, 0], sizes = [1, 8, 16], strides = [1, 1, 1]} : vector<32x8x16xf32> to vector<1x8x16xf32>
    %145 = vector.broadcast %143 : vector<2x1x1xf32> to vector<2x8x16xf32>
    %146 = vector.broadcast %144 : vector<1x8x16xf32> to vector<2x8x16xf32>
    %147 = arith.mulf %145, %146 : vector<2x8x16xf32>
    %148 = arith.addf %141, %147 : vector<2x8x16xf32>
    %149 = vector.extract_strided_slice %31 {offsets = [0, 16], sizes = [2, 1], strides = [1, 1]} : vector<2x32xf32> to vector<2x1xf32>
    %150 = vector.shape_cast %149 : vector<2x1xf32> to vector<2x1x1xf32>
    %151 = vector.extract_strided_slice %32 {offsets = [16, 0, 0], sizes = [1, 8, 16], strides = [1, 1, 1]} : vector<32x8x16xf32> to vector<1x8x16xf32>
    %152 = vector.broadcast %150 : vector<2x1x1xf32> to vector<2x8x16xf32>
    %153 = vector.broadcast %151 : vector<1x8x16xf32> to vector<2x8x16xf32>
    %154 = arith.mulf %152, %153 : vector<2x8x16xf32>
    %155 = arith.addf %148, %154 : vector<2x8x16xf32>
    %156 = vector.extract_strided_slice %31 {offsets = [0, 17], sizes = [2, 1], strides = [1, 1]} : vector<2x32xf32> to vector<2x1xf32>
    %157 = vector.shape_cast %156 : vector<2x1xf32> to vector<2x1x1xf32>
    %158 = vector.extract_strided_slice %32 {offsets = [17, 0, 0], sizes = [1, 8, 16], strides = [1, 1, 1]} : vector<32x8x16xf32> to vector<1x8x16xf32>
    %159 = vector.broadcast %157 : vector<2x1x1xf32> to vector<2x8x16xf32>
    %160 = vector.broadcast %158 : vector<1x8x16xf32> to vector<2x8x16xf32>
    %161 = arith.mulf %159, %160 : vector<2x8x16xf32>
    %162 = arith.addf %155, %161 : vector<2x8x16xf32>
    %163 = vector.extract_strided_slice %31 {offsets = [0, 18], sizes = [2, 1], strides = [1, 1]} : vector<2x32xf32> to vector<2x1xf32>
    %164 = vector.shape_cast %163 : vector<2x1xf32> to vector<2x1x1xf32>
    %165 = vector.extract_strided_slice %32 {offsets = [18, 0, 0], sizes = [1, 8, 16], strides = [1, 1, 1]} : vector<32x8x16xf32> to vector<1x8x16xf32>
    %166 = vector.broadcast %164 : vector<2x1x1xf32> to vector<2x8x16xf32>
    %167 = vector.broadcast %165 : vector<1x8x16xf32> to vector<2x8x16xf32>
    %168 = arith.mulf %166, %167 : vector<2x8x16xf32>
    %169 = arith.addf %162, %168 : vector<2x8x16xf32>
    %170 = vector.extract_strided_slice %31 {offsets = [0, 19], sizes = [2, 1], strides = [1, 1]} : vector<2x32xf32> to vector<2x1xf32>
    %171 = vector.shape_cast %170 : vector<2x1xf32> to vector<2x1x1xf32>
    %172 = vector.extract_strided_slice %32 {offsets = [19, 0, 0], sizes = [1, 8, 16], strides = [1, 1, 1]} : vector<32x8x16xf32> to vector<1x8x16xf32>
    %173 = vector.broadcast %171 : vector<2x1x1xf32> to vector<2x8x16xf32>
    %174 = vector.broadcast %172 : vector<1x8x16xf32> to vector<2x8x16xf32>
    %175 = arith.mulf %173, %174 : vector<2x8x16xf32>
    %176 = arith.addf %169, %175 : vector<2x8x16xf32>
    %177 = vector.extract_strided_slice %31 {offsets = [0, 20], sizes = [2, 1], strides = [1, 1]} : vector<2x32xf32> to vector<2x1xf32>
    %178 = vector.shape_cast %177 : vector<2x1xf32> to vector<2x1x1xf32>
    %179 = vector.extract_strided_slice %32 {offsets = [20, 0, 0], sizes = [1, 8, 16], strides = [1, 1, 1]} : vector<32x8x16xf32> to vector<1x8x16xf32>
    %180 = vector.broadcast %178 : vector<2x1x1xf32> to vector<2x8x16xf32>
    %181 = vector.broadcast %179 : vector<1x8x16xf32> to vector<2x8x16xf32>
    %182 = arith.mulf %180, %181 : vector<2x8x16xf32>
    %183 = arith.addf %176, %182 : vector<2x8x16xf32>
    %184 = vector.extract_strided_slice %31 {offsets = [0, 21], sizes = [2, 1], strides = [1, 1]} : vector<2x32xf32> to vector<2x1xf32>
    %185 = vector.shape_cast %184 : vector<2x1xf32> to vector<2x1x1xf32>
    %186 = vector.extract_strided_slice %32 {offsets = [21, 0, 0], sizes = [1, 8, 16], strides = [1, 1, 1]} : vector<32x8x16xf32> to vector<1x8x16xf32>
    %187 = vector.broadcast %185 : vector<2x1x1xf32> to vector<2x8x16xf32>
    %188 = vector.broadcast %186 : vector<1x8x16xf32> to vector<2x8x16xf32>
    %189 = arith.mulf %187, %188 : vector<2x8x16xf32>
    %190 = arith.addf %183, %189 : vector<2x8x16xf32>
    %191 = vector.extract_strided_slice %31 {offsets = [0, 22], sizes = [2, 1], strides = [1, 1]} : vector<2x32xf32> to vector<2x1xf32>
    %192 = vector.shape_cast %191 : vector<2x1xf32> to vector<2x1x1xf32>
    %193 = vector.extract_strided_slice %32 {offsets = [22, 0, 0], sizes = [1, 8, 16], strides = [1, 1, 1]} : vector<32x8x16xf32> to vector<1x8x16xf32>
    %194 = vector.broadcast %192 : vector<2x1x1xf32> to vector<2x8x16xf32>
    %195 = vector.broadcast %193 : vector<1x8x16xf32> to vector<2x8x16xf32>
    %196 = arith.mulf %194, %195 : vector<2x8x16xf32>
    %197 = arith.addf %190, %196 : vector<2x8x16xf32>
    %198 = vector.extract_strided_slice %31 {offsets = [0, 23], sizes = [2, 1], strides = [1, 1]} : vector<2x32xf32> to vector<2x1xf32>
    %199 = vector.shape_cast %198 : vector<2x1xf32> to vector<2x1x1xf32>
    %200 = vector.extract_strided_slice %32 {offsets = [23, 0, 0], sizes = [1, 8, 16], strides = [1, 1, 1]} : vector<32x8x16xf32> to vector<1x8x16xf32>
    %201 = vector.broadcast %199 : vector<2x1x1xf32> to vector<2x8x16xf32>
    %202 = vector.broadcast %200 : vector<1x8x16xf32> to vector<2x8x16xf32>
    %203 = arith.mulf %201, %202 : vector<2x8x16xf32>
    %204 = arith.addf %197, %203 : vector<2x8x16xf32>
    %205 = vector.extract_strided_slice %31 {offsets = [0, 24], sizes = [2, 1], strides = [1, 1]} : vector<2x32xf32> to vector<2x1xf32>
    %206 = vector.shape_cast %205 : vector<2x1xf32> to vector<2x1x1xf32>
    %207 = vector.extract_strided_slice %32 {offsets = [24, 0, 0], sizes = [1, 8, 16], strides = [1, 1, 1]} : vector<32x8x16xf32> to vector<1x8x16xf32>
    %208 = vector.broadcast %206 : vector<2x1x1xf32> to vector<2x8x16xf32>
    %209 = vector.broadcast %207 : vector<1x8x16xf32> to vector<2x8x16xf32>
    %210 = arith.mulf %208, %209 : vector<2x8x16xf32>
    %211 = arith.addf %204, %210 : vector<2x8x16xf32>
    %212 = vector.extract_strided_slice %31 {offsets = [0, 25], sizes = [2, 1], strides = [1, 1]} : vector<2x32xf32> to vector<2x1xf32>
    %213 = vector.shape_cast %212 : vector<2x1xf32> to vector<2x1x1xf32>
    %214 = vector.extract_strided_slice %32 {offsets = [25, 0, 0], sizes = [1, 8, 16], strides = [1, 1, 1]} : vector<32x8x16xf32> to vector<1x8x16xf32>
    %215 = vector.broadcast %213 : vector<2x1x1xf32> to vector<2x8x16xf32>
    %216 = vector.broadcast %214 : vector<1x8x16xf32> to vector<2x8x16xf32>
    %217 = arith.mulf %215, %216 : vector<2x8x16xf32>
    %218 = arith.addf %211, %217 : vector<2x8x16xf32>
    %219 = vector.extract_strided_slice %31 {offsets = [0, 26], sizes = [2, 1], strides = [1, 1]} : vector<2x32xf32> to vector<2x1xf32>
    %220 = vector.shape_cast %219 : vector<2x1xf32> to vector<2x1x1xf32>
    %221 = vector.extract_strided_slice %32 {offsets = [26, 0, 0], sizes = [1, 8, 16], strides = [1, 1, 1]} : vector<32x8x16xf32> to vector<1x8x16xf32>
    %222 = vector.broadcast %220 : vector<2x1x1xf32> to vector<2x8x16xf32>
    %223 = vector.broadcast %221 : vector<1x8x16xf32> to vector<2x8x16xf32>
    %224 = arith.mulf %222, %223 : vector<2x8x16xf32>
    %225 = arith.addf %218, %224 : vector<2x8x16xf32>
    %226 = vector.extract_strided_slice %31 {offsets = [0, 27], sizes = [2, 1], strides = [1, 1]} : vector<2x32xf32> to vector<2x1xf32>
    %227 = vector.shape_cast %226 : vector<2x1xf32> to vector<2x1x1xf32>
    %228 = vector.extract_strided_slice %32 {offsets = [27, 0, 0], sizes = [1, 8, 16], strides = [1, 1, 1]} : vector<32x8x16xf32> to vector<1x8x16xf32>
    %229 = vector.broadcast %227 : vector<2x1x1xf32> to vector<2x8x16xf32>
    %230 = vector.broadcast %228 : vector<1x8x16xf32> to vector<2x8x16xf32>
    %231 = arith.mulf %229, %230 : vector<2x8x16xf32>
    %232 = arith.addf %225, %231 : vector<2x8x16xf32>
    %233 = vector.extract_strided_slice %31 {offsets = [0, 28], sizes = [2, 1], strides = [1, 1]} : vector<2x32xf32> to vector<2x1xf32>
    %234 = vector.shape_cast %233 : vector<2x1xf32> to vector<2x1x1xf32>
    %235 = vector.extract_strided_slice %32 {offsets = [28, 0, 0], sizes = [1, 8, 16], strides = [1, 1, 1]} : vector<32x8x16xf32> to vector<1x8x16xf32>
    %236 = vector.broadcast %234 : vector<2x1x1xf32> to vector<2x8x16xf32>
    %237 = vector.broadcast %235 : vector<1x8x16xf32> to vector<2x8x16xf32>
    %238 = arith.mulf %236, %237 : vector<2x8x16xf32>
    %239 = arith.addf %232, %238 : vector<2x8x16xf32>
    %240 = vector.extract_strided_slice %31 {offsets = [0, 29], sizes = [2, 1], strides = [1, 1]} : vector<2x32xf32> to vector<2x1xf32>
    %241 = vector.shape_cast %240 : vector<2x1xf32> to vector<2x1x1xf32>
    %242 = vector.extract_strided_slice %32 {offsets = [29, 0, 0], sizes = [1, 8, 16], strides = [1, 1, 1]} : vector<32x8x16xf32> to vector<1x8x16xf32>
    %243 = vector.broadcast %241 : vector<2x1x1xf32> to vector<2x8x16xf32>
    %244 = vector.broadcast %242 : vector<1x8x16xf32> to vector<2x8x16xf32>
    %245 = arith.mulf %243, %244 : vector<2x8x16xf32>
    %246 = arith.addf %239, %245 : vector<2x8x16xf32>
    %247 = vector.extract_strided_slice %31 {offsets = [0, 30], sizes = [2, 1], strides = [1, 1]} : vector<2x32xf32> to vector<2x1xf32>
    %248 = vector.shape_cast %247 : vector<2x1xf32> to vector<2x1x1xf32>
    %249 = vector.extract_strided_slice %32 {offsets = [30, 0, 0], sizes = [1, 8, 16], strides = [1, 1, 1]} : vector<32x8x16xf32> to vector<1x8x16xf32>
    %250 = vector.broadcast %248 : vector<2x1x1xf32> to vector<2x8x16xf32>
    %251 = vector.broadcast %249 : vector<1x8x16xf32> to vector<2x8x16xf32>
    %252 = arith.mulf %250, %251 : vector<2x8x16xf32>
    %253 = arith.addf %246, %252 : vector<2x8x16xf32>
    %254 = vector.extract_strided_slice %31 {offsets = [0, 31], sizes = [2, 1], strides = [1, 1]} : vector<2x32xf32> to vector<2x1xf32>
    %255 = vector.shape_cast %254 : vector<2x1xf32> to vector<2x1x1xf32>
    %256 = vector.extract_strided_slice %32 {offsets = [31, 0, 0], sizes = [1, 8, 16], strides = [1, 1, 1]} : vector<32x8x16xf32> to vector<1x8x16xf32>
    %257 = vector.broadcast %255 : vector<2x1x1xf32> to vector<2x8x16xf32>
    %258 = vector.broadcast %256 : vector<1x8x16xf32> to vector<2x8x16xf32>
    %259 = arith.mulf %257, %258 : vector<2x8x16xf32>
    %260 = arith.addf %253, %259 : vector<2x8x16xf32>
    %c0_12 = arith.constant 0 : index
    %c0_13 = arith.constant 0 : index
    %261 = vector.load %arg5[%c0_12, %c0_13] : memref<2x8xi32, #tpu.memory_space<vmem>>, vector<2x8xi32>
    %262 = tpu.iota {dimensions = array<i32: 2>} : vector<2x8x16xi32>
    %263 = vector.shape_cast %261 : vector<2x8xi32> to vector<2x8x1xi32>
    %264 = vector.broadcast %263 : vector<2x8x1xi32> to vector<2x8x16xi32>
    %265 = arith.cmpi eq, %264, %262 : vector<2x8x16xi32>
    %266 = arith.extui %265 : vector<2x8x16xi1> to vector<2x8x16xi32>
    %267 = arith.sitofp %266 : vector<2x8x16xi32> to vector<2x8x16xf32>
    %cst_14 = arith.constant dense<0xFF800000> : vector<2x16xf32>
    %268 = vector.multi_reduction <maximumf>, %267, %cst_14 [1] : vector<2x8x16xf32> to vector<2x16xf32>
    %269 = tpu.iota {dimensions = array<i32: 1>} : vector<2x16xi32>
    %c0_i32 = arith.constant 0 : i32
    %270 = vector.broadcast %c0_i32 : i32 to vector<2x16xi32>
    %271 = arith.cmpi eq, %269, %270 : vector<2x16xi32>
    %cst_15 = arith.constant 0.000000e+00 : f32
    %272 = vector.broadcast %cst_15 : f32 to vector<2x16xf32>
    %273 = arith.select %271, %272, %268 : vector<2x16xi1>, vector<2x16xf32>
    %274 = tpu.iota {dimensions = array<i32: 1>} : vector<2x8xi32>
    %c0_i32_16 = arith.constant 0 : i32
    %275 = vector.broadcast %c0_i32_16 : i32 to vector<2x8xi32>
    %276 = arith.cmpi eq, %261, %275 : vector<2x8xi32>
    %c1_i32 = arith.constant 1 : i32
    %277 = vector.broadcast %c1_i32 : i32 to vector<2x8xi32>
    %278 = arith.cmpi sge, %274, %277 : vector<2x8xi32>
    %279 = arith.andi %276, %278 : vector<2x8xi1>
    %c8_i32 = arith.constant 8 : i32
    %280 = vector.broadcast %c8_i32 : i32 to vector<2x8xi32>
    %281 = arith.select %279, %274, %280 : vector<2x8xi1>, vector<2x8xi32>
    %cst_17 = arith.constant dense<2147483647> : vector<2xi32>
    %282 = vector.multi_reduction <minsi>, %281, %cst_17 [1] : vector<2x8xi32> to vector<2xi32>
    %283 = vector.shape_cast %282 : vector<2xi32> to vector<2x1xi32>
    %284 = vector.broadcast %283 : vector<2x1xi32> to vector<2x8xi32>
    %285 = arith.cmpi slt, %274, %284 : vector<2x8xi32>
    %286 = arith.extui %285 : vector<2x8xi1> to vector<2x8xi32>
    %287 = arith.sitofp %286 : vector<2x8xi32> to vector<2x8xf32>
    %cst_18 = arith.constant dense<0xFF800000> : vector<2x8xf32>
    %288 = vector.multi_reduction <maximumf>, %260, %cst_18 [2] : vector<2x8x16xf32> to vector<2x8xf32>
    %289 = vector.shape_cast %288 : vector<2x8xf32> to vector<2x8x1xf32>
    %290 = vector.broadcast %289 : vector<2x8x1xf32> to vector<2x8x16xf32>
    %291 = arith.subf %260, %290 : vector<2x8x16xf32>
    %292 = math.exp %291 : vector<2x8x16xf32>
    %cst_19 = arith.constant dense<0.000000e+00> : vector<2x8xf32>
    %293 = vector.multi_reduction <add>, %292, %cst_19 [2] : vector<2x8x16xf32> to vector<2x8xf32>
    %294 = vector.shape_cast %293 : vector<2x8xf32> to vector<2x8x1xf32>
    %295 = vector.broadcast %294 : vector<2x8x1xf32> to vector<2x8x16xf32>
    %296 = arith.divf %292, %295 : vector<2x8x16xf32>
    %297 = vector.extract_strided_slice %296 {offsets = [0, 0, 0], sizes = [2, 8, 1], strides = [1, 1, 1]} : vector<2x8x16xf32> to vector<2x8x1xf32>
    %298 = vector.shape_cast %297 : vector<2x8x1xf32> to vector<2x8xf32>
    %c0_i32_20 = arith.constant 0 : i32
    %299 = vector.broadcast %c0_i32_20 : i32 to vector<2x8xi32>
    %300 = arith.cmpi eq, %261, %299 : vector<2x8xi32>
    %c16_i32 = arith.constant 16 : i32
    %301 = vector.broadcast %c16_i32 : i32 to vector<2x8xi32>
    %302 = arith.cmpi eq, %261, %301 : vector<2x8xi32>
    %303 = arith.xori %300, %302 : vector<2x8xi1>
    %304 = arith.extui %303 : vector<2x8xi1> to vector<2x8xi32>
    %305 = arith.sitofp %304 : vector<2x8xi32> to vector<2x8xf32>
    %306 = arith.extui %300 : vector<2x8xi1> to vector<2x8xi32>
    %307 = arith.sitofp %306 : vector<2x8xi32> to vector<2x8xf32>
    %cst_21 = arith.constant dense<true> : vector<2x8xi1>
    %308 = arith.xori %302, %cst_21 : vector<2x8xi1>
    %cst_22 = arith.constant dense<true> : vector<2x8xi1>
    %309 = arith.xori %300, %cst_22 : vector<2x8xi1>
    %310 = arith.andi %308, %309 : vector<2x8xi1>
    %311 = arith.extui %310 : vector<2x8xi1> to vector<2x8xi32>
    %312 = arith.sitofp %311 : vector<2x8xi32> to vector<2x8xf32>
    %313 = vector.shape_cast %287 : vector<2x8xf32> to vector<2x8x1xf32>
    %314 = vector.broadcast %313 : vector<2x8x1xf32> to vector<2x8x16xf32>
    %315 = arith.mulf %296, %314 : vector<2x8x16xf32>
    %cst_23 = arith.constant dense<0xFF800000> : vector<2x16xf32>
    %316 = vector.multi_reduction <maximumf>, %315, %cst_23 [1] : vector<2x8x16xf32> to vector<2x16xf32>
    %317 = vector.broadcast %289 : vector<2x8x1xf32> to vector<2x8x16xf32>
    %318 = arith.cmpf oeq, %260, %317 : vector<2x8x16xf32>
    %319 = arith.extui %318 : vector<2x8x16xi1> to vector<2x8x16xi32>
    %320 = arith.sitofp %319 : vector<2x8x16xi32> to vector<2x8x16xf32>
    %321 = vector.broadcast %313 : vector<2x8x1xf32> to vector<2x8x16xf32>
    %322 = arith.mulf %320, %321 : vector<2x8x16xf32>
    %cst_24 = arith.constant dense<0xFF800000> : vector<2x16xf32>
    %323 = vector.multi_reduction <maximumf>, %322, %cst_24 [1] : vector<2x8x16xf32> to vector<2x16xf32>
    %c0_i32_25 = arith.constant 0 : i32
    %324 = vector.broadcast %c0_i32_25 : i32 to vector<2x16xi32>
    %325 = arith.cmpi eq, %269, %324 : vector<2x16xi32>
    %cst_26 = arith.constant 0.000000e+00 : f32
    %326 = vector.broadcast %cst_26 : f32 to vector<2x16xf32>
    %327 = arith.select %325, %326, %323 : vector<2x16xi1>, vector<2x16xf32>
    %328 = math.log %316 : vector<2x16xf32>
    %cst_27 = arith.constant -1.000000e+02 : f32
    %329 = vector.broadcast %cst_27 : f32 to vector<2x16xf32>
    %330 = arith.maximumf %328, %329 : vector<2x16xf32>
    %cst_28 = arith.constant 1.000000e+00 : f32
    %331 = vector.broadcast %cst_28 : f32 to vector<2x16xf32>
    %332 = arith.subf %331, %316 : vector<2x16xf32>
    %333 = math.log %332 : vector<2x16xf32>
    %cst_29 = arith.constant -1.000000e+02 : f32
    %334 = vector.broadcast %cst_29 : f32 to vector<2x16xf32>
    %335 = arith.maximumf %333, %334 : vector<2x16xf32>
    %336 = arith.mulf %273, %330 : vector<2x16xf32>
    %cst_30 = arith.constant 1.000000e+00 : f32
    %337 = vector.broadcast %cst_30 : f32 to vector<2x16xf32>
    %338 = arith.subf %337, %273 : vector<2x16xf32>
    %339 = arith.mulf %338, %335 : vector<2x16xf32>
    %340 = arith.addf %336, %339 : vector<2x16xf32>
    %cst_31 = arith.constant 0.000000e+00 : f32
    %341 = vector.broadcast %cst_31 : f32 to vector<2x16xf32>
    %342 = arith.subf %341, %340 : vector<2x16xf32>
    %cst_32 = arith.constant dense<0.000000e+00> : vector<2xf32>
    %343 = vector.multi_reduction <add>, %342, %cst_32 [1] : vector<2x16xf32> to vector<2xf32>
    %344 = vector.shape_cast %343 : vector<2xf32> to vector<2x1xf32>
    %cst_33 = arith.constant 1.600000e+01 : f32
    %345 = vector.broadcast %cst_33 : f32 to vector<2x1xf32>
    %346 = arith.divf %344, %345 : vector<2x1xf32>
    %347 = arith.mulf %316, %273 : vector<2x16xf32>
    %cst_34 = arith.constant dense<0.000000e+00> : vector<2xf32>
    %348 = vector.multi_reduction <add>, %347, %cst_34 [1] : vector<2x16xf32> to vector<2xf32>
    %349 = vector.shape_cast %348 : vector<2xf32> to vector<2x1xf32>
    %cst_35 = arith.constant dense<0.000000e+00> : vector<2xf32>
    %350 = vector.multi_reduction <add>, %273, %cst_35 [1] : vector<2x16xf32> to vector<2xf32>
    %351 = vector.shape_cast %350 : vector<2xf32> to vector<2x1xf32>
    %352 = arith.subf %349, %351 : vector<2x1xf32>
    %353 = math.absf %352 : vector<2x1xf32>
    %cst_36 = arith.constant 1.000000e+00 : f32
    %354 = vector.broadcast %cst_36 : f32 to vector<2x16xf32>
    %355 = arith.subf %354, %273 : vector<2x16xf32>
    %356 = arith.mulf %316, %355 : vector<2x16xf32>
    %cst_37 = arith.constant dense<0.000000e+00> : vector<2xf32>
    %357 = vector.multi_reduction <add>, %356, %cst_37 [1] : vector<2x16xf32> to vector<2xf32>
    %358 = vector.shape_cast %357 : vector<2xf32> to vector<2x1xf32>
    %359 = math.absf %358 : vector<2x1xf32>
    %360 = arith.addf %353, %359 : vector<2x1xf32>
    %361 = math.log %298 : vector<2x8xf32>
    %cst_38 = arith.constant -1.000000e+02 : f32
    %362 = vector.broadcast %cst_38 : f32 to vector<2x8xf32>
    %363 = arith.maximumf %361, %362 : vector<2x8xf32>
    %cst_39 = arith.constant 1.000000e+00 : f32
    %364 = vector.broadcast %cst_39 : f32 to vector<2x8xf32>
    %365 = arith.subf %364, %298 : vector<2x8xf32>
    %366 = math.log %365 : vector<2x8xf32>
    %cst_40 = arith.constant -1.000000e+02 : f32
    %367 = vector.broadcast %cst_40 : f32 to vector<2x8xf32>
    %368 = arith.maximumf %366, %367 : vector<2x8xf32>
    %369 = arith.mulf %305, %363 : vector<2x8xf32>
    %cst_41 = arith.constant 1.000000e+00 : f32
    %370 = vector.broadcast %cst_41 : f32 to vector<2x8xf32>
    %371 = arith.subf %370, %305 : vector<2x8xf32>
    %372 = arith.mulf %371, %368 : vector<2x8xf32>
    %373 = arith.addf %369, %372 : vector<2x8xf32>
    %cst_42 = arith.constant 0.000000e+00 : f32
    %374 = vector.broadcast %cst_42 : f32 to vector<2x8xf32>
    %375 = arith.subf %374, %373 : vector<2x8xf32>
    %376 = arith.mulf %375, %307 : vector<2x8xf32>
    %cst_43 = arith.constant dense<0.000000e+00> : vector<2xf32>
    %377 = vector.multi_reduction <add>, %376, %cst_43 [1] : vector<2x8xf32> to vector<2xf32>
    %378 = vector.shape_cast %377 : vector<2xf32> to vector<2x1xf32>
    %cst_44 = arith.constant 5.000000e-01 : f32
    %379 = vector.broadcast %cst_44 : f32 to vector<2x1xf32>
    %380 = arith.mulf %379, %378 : vector<2x1xf32>
    %cst_45 = arith.constant dense<0.000000e+00> : vector<2xf32>
    %381 = vector.multi_reduction <add>, %307, %cst_45 [1] : vector<2x8xf32> to vector<2xf32>
    %382 = vector.shape_cast %381 : vector<2xf32> to vector<2x1xf32>
    %cst_46 = arith.constant 9.99999997E-7 : f32
    %383 = vector.broadcast %cst_46 : f32 to vector<2x1xf32>
    %384 = arith.addf %382, %383 : vector<2x1xf32>
    %385 = arith.divf %380, %384 : vector<2x1xf32>
    %386 = arith.mulf %375, %312 : vector<2x8xf32>
    %cst_47 = arith.constant dense<0.000000e+00> : vector<2xf32>
    %387 = vector.multi_reduction <add>, %386, %cst_47 [1] : vector<2x8xf32> to vector<2xf32>
    %388 = vector.shape_cast %387 : vector<2xf32> to vector<2x1xf32>
    %cst_48 = arith.constant 5.000000e-01 : f32
    %389 = vector.broadcast %cst_48 : f32 to vector<2x1xf32>
    %390 = arith.mulf %389, %388 : vector<2x1xf32>
    %cst_49 = arith.constant dense<0.000000e+00> : vector<2xf32>
    %391 = vector.multi_reduction <add>, %312, %cst_49 [1] : vector<2x8xf32> to vector<2xf32>
    %392 = vector.shape_cast %391 : vector<2xf32> to vector<2x1xf32>
    %cst_50 = arith.constant 9.99999997E-7 : f32
    %393 = vector.broadcast %cst_50 : f32 to vector<2x1xf32>
    %394 = arith.addf %392, %393 : vector<2x1xf32>
    %395 = arith.divf %390, %394 : vector<2x1xf32>
    %396 = arith.addf %385, %395 : vector<2x1xf32>
    %397 = arith.mulf %327, %273 : vector<2x16xf32>
    %cst_51 = arith.constant dense<0.000000e+00> : vector<2xf32>
    %398 = vector.multi_reduction <add>, %397, %cst_51 [1] : vector<2x16xf32> to vector<2xf32>
    %399 = vector.shape_cast %398 : vector<2xf32> to vector<2x1xf32>
    %400 = arith.addf %327, %273 : vector<2x16xf32>
    %401 = arith.mulf %327, %273 : vector<2x16xf32>
    %402 = arith.subf %400, %401 : vector<2x16xf32>
    %cst_52 = arith.constant dense<0.000000e+00> : vector<2xf32>
    %403 = vector.multi_reduction <add>, %402, %cst_52 [1] : vector<2x16xf32> to vector<2xf32>
    %404 = vector.shape_cast %403 : vector<2xf32> to vector<2x1xf32>
    %cst_53 = arith.constant 9.99999997E-7 : f32
    %405 = vector.broadcast %cst_53 : f32 to vector<2x1xf32>
    %406 = arith.addf %404, %405 : vector<2x1xf32>
    %407 = arith.divf %399, %406 : vector<2x1xf32>
    %408 = tpu.iota {dimensions = array<i32: 1>} : vector<2x128xi32>
    %c0_i32_54 = arith.constant 0 : i32
    %409 = vector.broadcast %c0_i32_54 : i32 to vector<2x128xi32>
    %410 = arith.cmpi eq, %408, %409 : vector<2x128xi32>
    %c1_i32_55 = arith.constant 1 : i32
    %411 = vector.broadcast %c1_i32_55 : i32 to vector<2x128xi32>
    %412 = arith.cmpi eq, %408, %411 : vector<2x128xi32>
    %c2_i32 = arith.constant 2 : i32
    %413 = vector.broadcast %c2_i32 : i32 to vector<2x128xi32>
    %414 = arith.cmpi eq, %408, %413 : vector<2x128xi32>
    %c3_i32 = arith.constant 3 : i32
    %415 = vector.broadcast %c3_i32 : i32 to vector<2x128xi32>
    %416 = arith.cmpi eq, %408, %415 : vector<2x128xi32>
    %cst_56 = arith.constant 0.000000e+00 : f32
    %417 = vector.shape_cast %407 : vector<2x1xf32> to vector<2x1xf32>
    %418 = vector.broadcast %417 : vector<2x1xf32> to vector<2x128xf32>
    %419 = vector.broadcast %cst_56 : f32 to vector<2x128xf32>
    %420 = arith.select %416, %418, %419 : vector<2x128xi1>, vector<2x128xf32>
    %421 = vector.shape_cast %396 : vector<2x1xf32> to vector<2x1xf32>
    %422 = vector.broadcast %421 : vector<2x1xf32> to vector<2x128xf32>
    %423 = arith.select %414, %422, %420 : vector<2x128xi1>, vector<2x128xf32>
    %424 = vector.shape_cast %360 : vector<2x1xf32> to vector<2x1xf32>
    %425 = vector.broadcast %424 : vector<2x1xf32> to vector<2x128xf32>
    %426 = arith.select %412, %425, %423 : vector<2x128xi1>, vector<2x128xf32>
    %427 = vector.shape_cast %346 : vector<2x1xf32> to vector<2x1xf32>
    %428 = vector.broadcast %427 : vector<2x1xf32> to vector<2x128xf32>
    %429 = arith.select %410, %428, %426 : vector<2x128xi1>, vector<2x128xf32>
    %c0_57 = arith.constant 0 : index
    %c0_58 = arith.constant 0 : index
    %430 = vector.load %arg6[%c0_57, %c0_58] : memref<2x128xf32, #tpu.memory_space<vmem>>, vector<2x128xf32>
    tpu.vector_store %arg6[%c0_57, %c0_58], %429 {strides = array<i32>} : memref<2x128xf32, #tpu.memory_space<vmem>>, vector<2x128xf32>,
    return
  }
}

</mosaic_0001>

<bundles_post_ra>
// kernel: inverse_cooking_forward.1
= control target key start
LH: loop header
LB: loop body
LE: loop exit
PB: predicated region body
PF: predicated region fallthrough
CT: control target
= control target key end

     0   :  { %v67_v0 = vlaneseq  ;;  %vm38_vm0 = vcmask 1043456   ;;  %v1405_v22 = vmov 0   ;;  %v1406_v23 = vmov 256.0   ;;  %s1998_s0 = inlined_call_operand.vmem [shape: f32[2,4,256], index: 0, kind: input, shape index: {}]   ;;  %s1999_s1 = inlined_call_operand.vmem [shape: f32[4,32], index: 1, kind: input, shape index: {}]   ;;  %s2000_s2 = inlined_call_operand.vmem [shape: f32[1,32], index: 2, kind: input, shape index: {}]   ;;  %s2001_s3 = inlined_call_operand.vmem [shape: f32[32,8,16], index: 3, kind: input, shape index: {}]   ;;  %s2002_s4 = inlined_call_operand.vmem [shape: f32[8,16], index: 4, kind: input, shape index: {}]   ;;  %s2003_s5 = inlined_call_operand.vmem [shape: s32[2,8], index: 5, kind: input, shape index: {}]   ;;  %s2004_s6 = inlined_call_operand.vmem [shape: f32[2,128], index: 6, kind: output, shape index: {}]  }
   0x1   :  { %v23_v1 = vld [vmem:[%s1998_s0] sm:$0xff]  ;;  %v24_v2 = vld [vmem:[%s1998_s0 + $0x8] sm:$0xff]  ;;  %1371 = vrcp.f32 %v1406_v23  ;;  %vm140_vm2 = vcmask 130112   ;;  %vm144_vm3 = vcmask 195712   ;;  %vm148_vm4 = vcmask 261312  }
   0x2   :  { %v1483_v3 = vshrl.u32 %v67_v0, 7  ;;  %27 = vst [vmem:[#allocation1] ss:$2 sm:$0xff] %v23_v1  ;;  %v58_v6 = vld [vmem:[%s1999_s1] sm:$0xf]  ;;  %vm157_vm5 = vcmask 1041409  }
   0x3   :  { %31 = vst [vmem:[#allocation1 + $0x10] ss:$2 sm:$0xff] %v24_v2  ;;  %v65_v7 = vperm.slane %v58_v6, 0  ;;  %v163_v19 = vperm.slane %v58_v6, 1  ;;  %v252_v20 = vperm.slane %v58_v6, 2  ;;  %v1498_v21 = vperm.slane %v58_v6, 3 }
   0x4   :  { %1277 = vset.pattern.permute.xlu1 %v1483_v3  ;;  %v81_v4 = vadd.s32 16, %v1483_v3  ;;  %v1488_v5 = vadd.s32 24, %v1483_v3  ;;  %v75_v17 = vadd.s32 8, %v1483_v3  ;;  %vm895_vm9 = vcmask 58368  }
   0x5   :  { %vm870_vm10 = vcmask 130048  }
   0x6   :  { %1279 = vset.pattern.permute.xlu2 %v81_v4  ;;  %1283 = vset.pattern.permute.xlu0 %v1488_v5 }
   0x7   :  { %v1372_v24 = vpop.eup %1371 }
   0x8   :  { %v50_v25 = vmul.f32 256.0, %v1372_v24  ;;  %vm54_vm1 = vweird.f32 %v1372_v24 }
   0x9   :  { %v28_v8 = vld.sshfl [vmem:[#allocation1] sm:$0xff pattern:$0x75316420]  ;;  %v29_v9 = vld.sshfl [vmem:[#allocation1 + $0x8] sm:$0xff pattern:$0x75316420] }
   0xa   :  { %v39_v10 = vsel %vm38_vm0, %v28_v8, 0.0  ;;  %v40_v11 = vsel %vm38_vm0, %v29_v9, 0.0  ;;  %v32_v13 = vld.sshfl [vmem:[#allocation1 + $0x10] sm:$0xff pattern:$0x75316420]  ;;  %v51_v26 = vsub.f32 1.0, %v50_v25 }
   0xb   :  { %v41_v12 = vadd.f32 %v40_v11, %v39_v10  ;;  %v33_v14 = vld.sshfl [vmem:[#allocation1 + $0x18] sm:$0xff pattern:$0x75316420]  ;;  %v44_v15 = vsel %vm38_vm0, %v32_v13, 0.0 }
   0xc   :  { %71 = vperm.xlu1 %1277, %v65_v7   ;;  %v45_v16 = vsel %vm38_vm0, %v33_v14, 0.0  ;;  %v52_v27 = vmul.f32 %v1372_v24, %v51_v26  ;;  %v1532_v26 = vand.u32 127, %v67_v0 }
   0xd   :  { %42 = vadd.xlane.f32.xlu0 %v41_v12  ;;  %v46_v18 = vadd.f32 %v45_v16, %v44_v15 }
   0xe   :  { %83 = vperm.xlu2 %1279, %v65_v7   ;;  %v53_v29 = vadd.f32 %v1372_v24, %v52_v27  ;;  %vm892_vm7 = vcmp.ge.s32.totalorder %v1532_v26, 1 }
  0x10   :  { %v55_v30 = vsel %vm54_vm1, %v1372_v24, %v53_v29  ;;  %v1536_v29 = vadd.s32 4294967280, %v1532_v26 }
  0x14   :  { %1278 = vset.pattern.permute.xlu1 %v75_v17 }
  0x15   :  { %47 = vadd.xlane.f32.xlu0 %v46_v18 }
  0x16   :  { %1280 = vset.pattern.permute.xlu2 %v1488_v5 }
  0x1c   :  { %77 = vperm.xlu1 %1278, %v65_v7  }
  0x1e   :  { %89 = vperm.xlu2 %1280, %v65_v7  }
  0x24   :  { %175 = vperm.xlu1 %1278, %v163_v19  }
  0x26   :  { %1281 = vset.pattern.permute.xlu2 %v1483_v3 }
  0x29   :  { %187 = vperm.xlu0 %1283, %v163_v19  }
  0x2c   :  { %1286 = vset.pattern.permute.xlu1 %v81_v4 }
  0x2e   :  { %169 = vperm.xlu2 %1281, %v163_v19  }
  0x31   :  { %1285 = vset.pattern.permute.xlu0 %v75_v17 }
  0x34   :  { %270 = vperm.xlu1 %1286, %v252_v20  }
  0x36   :  { %1282 = vset.pattern.permute.xlu2 %v81_v4 }
  0x39   :  { %264 = vperm.xlu0 %1285, %v252_v20  }
  0x3c   :  { %1288 = vset.pattern.permute.xlu1 %v1483_v3 }
  0x3e   :  { %181 = vperm.xlu2 %1282, %v163_v19  }
  0x41   :  { %1290 = vset.pattern.permute.xlu0 %v81_v4 }
  0x44   :  { %347 = vperm.xlu1 %1288, %v1498_v21  }
  0x46   :  { %1284 = vset.pattern.permute.xlu2 %v1483_v3 }
  0x49   :  { %359 = vperm.xlu0 %1290, %v1498_v21  }
  0x4c   :  { %1292 = vset.pattern.permute.xlu1 %v1405_v22 }
  0x4e   :  { %258 = vperm.xlu2 %1284, %v252_v20  }
  0x51   :  { %1291 = vset.pattern.permute.xlu0 %v1405_v22 }
  0x56   :  { %1287 = vset.pattern.permute.xlu2 %v1488_v5 }
  0x5e   :  { %276 = vperm.xlu2 %1287, %v252_v20  }
  0x66   :  { %1289 = vset.pattern.permute.xlu2 %v75_v17 }
  0x68   :  { %v84_v28 = vpop.permute.xlu2 %83 }
  0x6e   :  { %353 = vperm.xlu2 %1289, %v1498_v21  }
  0x76   :  { %1293 = vset.pattern.permute.xlu2 %v1405_v22 }
  0x78   :  { %v90_v33 = vpop.permute.xlu2 %89 }
  0x7e   :  { %v72_v35 = vpop.permute.xlu1 %71 }
  0x80   :  { %v43_v31 = vpop.xlane.xlu0 %42 }
  0x81   :  { %v1508_v32 = vmul.f32 %v55_v30, %v43_v31  ;;  %v1539_v31 = vadd.s32 4294967288, %v1532_v26 }
  0x83   :  { %v63_v34 = vperm.slane %v1508_v32, 0  ;;  %v161_v50 = vperm.slane %v1508_v32, 1  ;;  %v250_v54 = vperm.slane %v1508_v32, 2  ;;  %v1519_v13 = vperm.slane %v1508_v32, 3 }
  0x85   :  { %v97_v36 = vmul.f32 %v84_v28, %v63_v34  ;;  %v95_v37 = vmul.f32 %v72_v35, %v63_v34  ;;  %v98_v48 = vmul.f32 %v90_v33, %v63_v34 }
  0x87   :  { %118 = vperm.xlu2 %1293, %v97_v36   ;;  %112 = vperm.xlu0 %1291, %v95_v37   ;;  %v1548_v37 = vadd.s32 4294967272, %v1532_v26 }
  0x88   :  { %v48_v38 = vpop.xlane.xlu0 %47  ;;  %v170_v42 = vpop.permute.xlu2 %169 }
  0x89   :  { %v1511_v39 = vmul.f32 %v55_v30, %v48_v38  ;;  %v193_v61 = vmul.f32 %v170_v42, %v161_v50 }
  0x8b   :  { %v64_v40 = vperm.slane %v1511_v39, 0  ;;  %v162_v41 = vperm.slane %v1511_v39, 1  ;;  %v251_v2 = vperm.slane %v1511_v39, 2  ;;  %v1524_v20 = vperm.slane %v1511_v39, 3 }
  0x8d   :  { %v197_v43 = vmul.f32 %v170_v42, %v162_v41  ;;  %v99_v44 = vmul.f32 %v72_v35, %v64_v40  ;;  %v101_v47 = vmul.f32 %v84_v28, %v64_v40  ;;  %v102_v58 = vmul.f32 %v90_v33, %v64_v40 }
  0x8e   :  { %v78_v45 = vpop.permute.xlu1 %77 }
  0x8f   :  { %v96_v46 = vmul.f32 %v78_v45, %v63_v34  ;;  %124 = vperm.xlu2 %1293, %v99_v44   ;;  %222 = vperm.xlu0 %1291, %v197_v43   ;;  %v100_v52 = vmul.f32 %v78_v45, %v64_v40 }
  0x91   :  { %115 = vperm.xlu1 %1292, %v96_v46  }
  0x96   :  { %v176_v49 = vpop.permute.xlu1 %175 }
  0x97   :  { %130 = vperm.xlu2 %1293, %v101_v47   ;;  %v194_v51 = vmul.f32 %v176_v49, %v161_v50  ;;  %v198_v9 = vmul.f32 %v176_v49, %v162_v41 }
  0x98   :  { %v182_v59 = vpop.permute.xlu2 %181 }
  0x99   :  { %121 = vperm.xlu1 %1292, %v98_v48   ;;  %v199_v60 = vmul.f32 %v182_v59, %v162_v41  ;;  %v195_v4 = vmul.f32 %v182_v59, %v161_v50 }
  0x9b   :  { %v188_v53 = vpop.permute.xlu0 %187 }
  0x9c   :  { %v196_v55 = vmul.f32 %v188_v53, %v161_v50  ;;  %v200_v11 = vmul.f32 %v188_v53, %v162_v41 }
  0x9f   :  { %213 = vperm.xlu2 %1293, %v194_v51  }
  0xa1   :  { %127 = vperm.xlu1 %1292, %v100_v52  }
  0xa6   :  { %v271_v56 = vpop.permute.xlu1 %270 }
  0xa7   :  { %v284_v57 = vmul.f32 %v271_v56, %v250_v54  ;;  %219 = vperm.xlu2 %1293, %v196_v55   ;;  %v288_v10 = vmul.f32 %v271_v56, %v251_v2 }
  0xa8   :  { %v259_v62 = vpop.permute.xlu2 %258 }
  0xa9   :  { %305 = vperm.xlu0 %1291, %v284_v57   ;;  %133 = vperm.xlu1 %1292, %v102_v58   ;;  %v286_v8 = vmul.f32 %v259_v62, %v251_v2  ;;  %v282_v15 = vmul.f32 %v259_v62, %v250_v54 }
  0xab   :  { %v265_v63 = vpop.permute.xlu0 %264 }
  0xac   :  { %v283_v1 = vmul.f32 %v265_v63, %v250_v54  ;;  %v287_v24 = vmul.f32 %v265_v63, %v251_v2 }
  0xaf   :  { %228 = vperm.xlu2 %1293, %v199_v60  }
  0xb1   :  { %210 = vperm.xlu1 %1292, %v193_v61  }
  0xb6   :  { %v348_v12 = vpop.permute.xlu1 %347 }
  0xb7   :  { %302 = vperm.xlu2 %1293, %v283_v1   ;;  %v371_v14 = vmul.f32 %v348_v12, %v1519_v13  ;;  %v375_v28 = vmul.f32 %v348_v12, %v1524_v20 }
  0xb8   :  { %v277_v6 = vpop.permute.xlu2 %276 }
  0xb9   :  { %v289_v7 = vmul.f32 %v277_v6, %v251_v2  ;;  %216 = vperm.xlu1 %1292, %v195_v4   ;;  %v285_v18 = vmul.f32 %v277_v6, %v250_v54  ;;  %v1370_v4 = vld [vmem:[%s2000_s2] ss:$0 sm:$0xff] }
  0xbb   :  { %320 = vperm.xlu0 %1291, %v289_v7   ;;  %v360_v16 = vpop.permute.xlu0 %359 }
  0xbc   :  { %v373_v17 = vmul.f32 %v360_v16, %v1519_v13  ;;  %v377_v35 = vmul.f32 %v360_v16, %v1524_v20 }
  0xbf   :  { %311 = vperm.xlu2 %1293, %v286_v8  }
  0xc1   :  { %225 = vperm.xlu1 %1292, %v198_v9  }
  0xc7   :  { %317 = vperm.xlu2 %1293, %v288_v10  }
  0xc8   :  { %v354_v19 = vpop.permute.xlu2 %353 }
  0xc9   :  { %231 = vperm.xlu1 %1292, %v200_v11   ;;  %v376_v23 = vmul.f32 %v354_v19, %v1524_v20  ;;  %v372_v25 = vmul.f32 %v354_v19, %v1519_v13 }
  0xcf   :  { %388 = vperm.xlu2 %1293, %v371_v14  }
  0xd1   :  { %299 = vperm.xlu1 %1292, %v282_v15  }
  0xd7   :  { %394 = vperm.xlu2 %1293, %v373_v17  }
  0xd9   :  { %308 = vperm.xlu1 %1292, %v285_v18  }
  0xdf   :  { %403 = vperm.xlu2 %1293, %v376_v23  }
  0xe1   :  { %314 = vperm.xlu1 %1292, %v287_v24   ;;  %v119_v27 = vpop.permute.xlu2 %118 }
  0xe2   :  { %v143_v0 = vperm.slane %v119_v27, %v1536_v29 }
  0xe9   :  { %1294 = vset.pattern.permute.xlu1 %v1488_v5  ;;  %v125_v36 = vpop.permute.xlu2 %124 }
  0xea   :  { %v150_v43 = vperm.slane %v125_v36, %v1532_v26 }
  0xf1   :  { %365 = vperm.xlu1 %1294, %v1498_v21   ;;  %v131_v41 = vpop.permute.xlu2 %130 }
  0xf2   :  { %v153_v45 = vperm.slane %v131_v41, %v1536_v29 }
  0xf9   :  { %1295 = vset.pattern.permute.xlu1 %v1405_v22  ;;  %v113_v30 = vpop.permute.xlu0 %112  ;;  %v214_v52 = vpop.permute.xlu2 %213 }
  0xfa   :  { %391 = vperm.xlu1 %1295, %v372_v25   ;;  %v137_v21 = vperm.slane %v113_v30, %v1532_v26  ;;  %v234_v54 = vperm.slane %v214_v52, %v1539_v31  ;;  %v1408_v52 = vmov 1  }
 0x101   :  { %v220_v57 = vpop.permute.xlu2 %219  ;;  %v223_v63 = vpop.permute.xlu0 %222 }
 0x102   :  { %400 = vperm.xlu1 %1295, %v375_v28   ;;  %v240_v2 = vperm.slane %v223_v63, %v1532_v26  ;;  %v238_v9 = vperm.slane %v220_v57, %v1548_v37 }
 0x103   :  { %v116_v5 = vpop.permute.xlu1 %115 }
 0x104   :  { %v139_v32 = vperm.slane %v116_v5, %v1539_v31 }
 0x106   :  { %v141_v33 = vsel %vm140_vm2, %v139_v32, %v137_v21 }
 0x107   :  { %v145_v34 = vsel %vm144_vm3, %v143_v0, %v141_v33 }
 0x109   :  { %v229_v62 = vpop.permute.xlu2 %228 }
 0x10a   :  { %406 = vperm.xlu1 %1295, %v377_v35   ;;  %v243_v7 = vperm.slane %v229_v62, %v1536_v29 }
 0x10b   :  { %v122_v38 = vpop.permute.xlu1 %121 }
 0x10c   :  { %v147_v39 = vperm.slane %v122_v38, %v1548_v37 }
 0x10e   :  { %v149_v40 = vsel %vm148_vm4, %v147_v39, %v145_v34 }
 0x111   :  { %v303_v12 = vpop.permute.xlu2 %302 }
 0x112   :  { %v323_v24 = vperm.slane %v303_v12, %v1539_v31  ;;  %v1411_v12 = vmov 4  }
 0x113   :  { %v128_v42 = vpop.permute.xlu1 %127 }
 0x114   :  { %v151_v44 = vperm.slane %v128_v42, %v1539_v31 }
 0x116   :  { %v152_v46 = vsel %vm140_vm2, %v151_v44, %v150_v43 }
 0x117   :  { %v154_v47 = vsel %vm144_vm3, %v153_v45, %v152_v46 }
 0x119   :  { %v312_v25 = vpop.permute.xlu2 %311 }
 0x11a   :  { %v329_v36 = vperm.slane %v312_v25, %v1532_v26 }
 0x11b   :  { %v134_v48 = vpop.permute.xlu1 %133  ;;  %v306_v27 = vpop.permute.xlu0 %305 }
 0x11c   :  { %v155_v49 = vperm.slane %v134_v48, %v1548_v37  ;;  %v325_v30 = vperm.slane %v306_v27, %v1536_v29  ;;  %v1419_v27 = vmov 11  }
 0x11e   :  { %v156_v50 = vsel %vm148_vm4, %v155_v49, %v154_v47 }
 0x11f   :  { %v158_v51 = vsel %vm157_vm5, %v156_v50, %v149_v40 }
 0x120   :  { %v160_v14 = vadd.f32 %v1370_v4, %v158_v51  ;;  %v1407_v51 = vmov 2  }
 0x121   :  { %v318_v33 = vpop.permute.xlu2 %317  ;;  %1297 = vset.pattern.permute.xlu1 %v1407_v51 }
 0x122   :  { %v332_v39 = vperm.slane %v318_v33, %v1536_v29  ;;  %v1425_v33 = vmov 24  }
 0x123   :  { %v211_v53 = vpop.permute.xlu1 %210 }
 0x124   :  { %v233_v55 = vperm.slane %v211_v53, %v1532_v26 }
 0x126   :  { %v235_v56 = vsel %vm140_vm2, %v234_v54, %v233_v55 }
 0x129   :  { %v389_v49 = vpop.permute.xlu2 %388 }
 0x12b   :  { %v217_v58 = vpop.permute.xlu1 %216 }
 0x12c   :  { %v236_v59 = vperm.slane %v217_v58, %v1536_v29 }
 0x12d   :  { %v321_v34 = vpop.permute.xlu0 %320 }
 0x12e   :  { %v237_v60 = vsel %vm144_vm3, %v236_v59, %v235_v56  ;;  %v334_v40 = vperm.slane %v321_v34, %v1548_v37 }
 0x12f   :  { %v239_v15 = vsel %vm148_vm4, %v238_v9, %v237_v60 }
 0x131   :  { %v395_v53 = vpop.permute.xlu2 %394 }
 0x132   :  { %v414_v63 = vperm.slane %v395_v53, %v1536_v29  ;;  %v1429_v53 = vmov 31  }
 0x133   :  { %v226_v61 = vpop.permute.xlu1 %225 }
 0x134   :  { %v241_v1 = vperm.slane %v226_v61, %v1539_v31 }
 0x136   :  { %v242_v6 = vsel %vm140_vm2, %v241_v1, %v240_v2 }
 0x137   :  { %v244_v11 = vsel %vm144_vm3, %v243_v7, %v242_v6 }
 0x139   :  { %v404_v55 = vpop.permute.xlu2 %403 }
 0x13a   :  { %v419_v60 = vperm.slane %v404_v55, %v1539_v31 }
 0x13b   :  { %v232_v8 = vpop.permute.xlu1 %231 }
 0x13c   :  { %v245_v10 = vperm.slane %v232_v8, %v1548_v37 }
 0x13e   :  { %v246_v16 = vsel %vm148_vm4, %v245_v10, %v244_v11 }
 0x13f   :  { %v247_v17 = vsel %vm157_vm5, %v246_v16, %v239_v15  ;;  %v1413_v15 = vmov 6   ;;  %v1414_v16 = vmov 9  }
 0x140   :  { %v249_v18 = vadd.f32 %v247_v17, %v160_v14  ;;  %v1412_v14 = vmov 7   ;;  %v1415_v17 = vmov 8  }
 0x143   :  { %v300_v19 = vpop.permute.xlu1 %299 }
 0x144   :  { %v322_v23 = vperm.slane %v300_v19, %v1532_v26  ;;  %v1417_v19 = vmov 14  }
 0x146   :  { %v324_v28 = vsel %vm140_vm2, %v323_v24, %v322_v23  ;;  %v1418_v24 = vmov 12  }
 0x147   :  { %v326_v32 = vsel %vm144_vm3, %v325_v30, %v324_v28  ;;  %v1420_v28 = vmov 13   ;;  %v1421_v30 = vmov 15  }
 0x14b   :  { %v309_v5 = vpop.permute.xlu1 %308 }
 0x14c   :  { %v327_v21 = vperm.slane %v309_v5, %v1548_v37  ;;  %v1422_v5 = vmov 16  }
 0x14e   :  { %v328_v0 = vsel %vm148_vm4, %v327_v21, %v326_v32  ;;  %v1423_v21 = vmov 19   ;;  %v1424_v32 = vmov 21  }
 0x153   :  { %v315_v35 = vpop.permute.xlu1 %314 }
 0x154   :  { %v330_v38 = vperm.slane %v315_v35, %v1539_v31  ;;  %v1426_v35 = vmov 26  }
 0x156   :  { %v331_v41 = vsel %vm140_vm2, %v330_v38, %v329_v36  ;;  %v1427_v38 = vmov 29  }
 0x157   :  { %v333_v42 = vsel %vm144_vm3, %v332_v39, %v331_v41  ;;  %v1661_v39 = vld [vmem:[%s2001_s3] sm:$0xff]  ;;  %v1668_v41 = vld [vmem:[%s2001_s3 + $0x8] sm:$0xff] }
 0x158   :  { %v335_v43 = vsel %vm148_vm4, %v334_v40, %v333_v42  ;;  %v1674_v42 = vld [vmem:[%s2002_s4] sm:$0xff] }
 0x159   :  { %v336_v44 = vsel %vm157_vm5, %v335_v43, %v328_v0 }
 0x15a   :  { %v338_v45 = vadd.f32 %v336_v44, %v249_v18  ;;  %v1416_v18 = vmov 10  }
 0x163   :  { %v366_v46 = vpop.permute.xlu1 %365 }
 0x164   :  { %v374_v47 = vmul.f32 %v366_v46, %v1519_v13  ;;  %v378_v48 = vmul.f32 %v366_v46, %v1524_v20  ;;  %v411_v13 = vperm.slane %v389_v49, %v1532_v26 }
 0x166   :  { %397 = vperm.xlu0 %1291, %v374_v47   ;;  %409 = vperm.xlu2 %1293, %v378_v48  }
 0x16c   :  { %v392_v50 = vpop.permute.xlu1 %391 }
 0x16d   :  { %v412_v56 = vperm.slane %v392_v50, %v1539_v31 }
 0x16e   :  { %1296 = vset.pattern.permute.xlu2 %v1408_v52 }
 0x16f   :  { %v413_v61 = vsel %vm140_vm2, %v412_v56, %v411_v13  ;;  %v1695_v56 = vld [vmem:[%s2001_s3 + $0x20] sm:$0xff]  ;;  %v1703_v13 = vld [vmem:[%s2001_s3 + $0x28] sm:$0xff] }
 0x170   :  { %v415_v7 = vsel %vm144_vm3, %v414_v63, %v413_v61 }
 0x174   :  { %v401_v54 = vpop.permute.xlu1 %400 }
 0x175   :  { %v418_v20 = vperm.slane %v401_v54, %v1532_v26 }
 0x177   :  { %v420_v2 = vsel %vm140_vm2, %v419_v60, %v418_v20  ;;  %v1709_v60 = vld [vmem:[%s2001_s3 + $0x30] sm:$0xff] }
 0x17c   :  { %v407_v57 = vpop.permute.xlu1 %406 }
 0x17d   :  { %v421_v59 = vperm.slane %v407_v57, %v1536_v29  ;;  %v1409_v29 = vmov 3  }
 0x17f   :  { %v422_v6 = vsel %vm144_vm3, %v421_v59, %v420_v2 }
 0x1c0   :  { %v410_v58 = vpop.permute.xlu2 %409 }
 0x1c1   :  { %v423_v62 = vperm.slane %v410_v58, %v1548_v37 }
 0x1c3   :  { %v424_v8 = vsel %vm148_vm4, %v423_v62, %v422_v6  ;;  %v1716_v6 = vld [vmem:[%s2001_s3 + $0x38] sm:$0xff] }
 0x1d8   :  { %v398_v1 = vpop.permute.xlu0 %397 }
 0x1d9   :  { %v416_v4 = vperm.slane %v398_v1, %v1548_v37  ;;  %v1410_v37 = vmov 5  }
 0x1db   :  { %v417_v9 = vsel %vm148_vm4, %v416_v4, %v415_v7  ;;  %v1430_v4 = vmov 18  }
 0x1dc   :  { %v425_v31 = vsel %vm157_vm5, %v424_v8, %v417_v9 }
 0x1dd   :  { %v427_v10 = vadd.f32 %v425_v31, %v338_v45  ;;  %v1680_v45 = vld [vmem:[%s2001_s3 + $0x10] sm:$0xff] }
 0x1df   :  { %v1611_v11 = vperm.slane %v427_v10, 0  ;;  %v462_v23 = vrot.slane %v427_v10, 1 }
 0x1e1   :  { %490 = vperm.xlu1 %1297, %v1611_v11   ;;  %478 = vperm.xlu2 %1296, %v1611_v11   ;;  %v1625_v25 = vperm.slane %v462_v23, 0  ;;  %v1745_v23 = vld [vmem:[%s2001_s3 + $0x58] sm:$0xff] }
 0x1e2   :  { %466 = vperm.xlu0 %1291, %v1611_v11  }
 0x1e9   :  { %1298 = vset.pattern.permute.xlu1 %v1409_v29  ;;  %1300 = vset.pattern.permute.xlu2 %v1410_v37 }
 0x1ea   :  { %1299 = vset.pattern.permute.xlu0 %v1411_v12  ;;  %502 = vperm.xlu1 %1298, %v1611_v11  }
 0x1eb   :  { %526 = vperm.xlu2 %1300, %v1611_v11   ;;  %514 = vperm.xlu0 %1299, %v1611_v11  }
 0x1f2   :  { %1302 = vset.pattern.permute.xlu1 %v1412_v14 }
 0x1f3   :  { %1301 = vset.pattern.permute.xlu2 %v1413_v15  ;;  %1304 = vset.pattern.permute.xlu0 %v1414_v16 }
 0x1f4   :  { %550 = vperm.xlu1 %1302, %v1611_v11   ;;  %538 = vperm.xlu2 %1301, %v1611_v11  }
 0x1f5   :  { %574 = vperm.xlu0 %1304, %v1611_v11  }
 0x1fc   :  { %1303 = vset.pattern.permute.xlu1 %v1415_v17  ;;  %1305 = vset.pattern.permute.xlu2 %v1416_v18 }
 0x1fd   :  { %1309 = vset.pattern.permute.xlu0 %v1417_v19  ;;  %562 = vperm.xlu1 %1303, %v1611_v11  }
 0x1fe   :  { %586 = vperm.xlu2 %1305, %v1611_v11   ;;  %634 = vperm.xlu0 %1309, %v1611_v11  }
 0x205   :  { %1307 = vset.pattern.permute.xlu1 %v1418_v24 }
 0x206   :  { %1306 = vset.pattern.permute.xlu2 %v1419_v27  ;;  %1313 = vset.pattern.permute.xlu0 %v1408_v52  ;;  %v1428_v52 = vmov 17  }
 0x207   :  { %610 = vperm.xlu1 %1307, %v1611_v11   ;;  %598 = vperm.xlu2 %1306, %v1611_v11  }
 0x208   :  { %482 = vperm.xlu0 %1313, %v1625_v25  }
 0x20f   :  { %1308 = vset.pattern.permute.xlu1 %v1420_v28  ;;  %1310 = vset.pattern.permute.xlu2 %v1421_v30 }
 0x210   :  { %1318 = vset.pattern.permute.xlu0 %v1413_v15  ;;  %622 = vperm.xlu1 %1308, %v1611_v11  }
 0x211   :  { %646 = vperm.xlu2 %1310, %v1611_v11   ;;  %542 = vperm.xlu0 %1318, %v1625_v25  }
 0x218   :  { %1312 = vset.pattern.permute.xlu1 %v1405_v22 }
 0x219   :  { %1311 = vset.pattern.permute.xlu2 %v1422_v5  ;;  %1323 = vset.pattern.permute.xlu0 %v1419_v27 }
 0x21a   :  { %658 = vperm.xlu2 %1311, %v1611_v11   ;;  %602 = vperm.xlu0 %1323, %v1625_v25  }
 0x21b   :  { %470 = vperm.xlu1 %1312, %v1625_v25  }
 0x222   :  { %1314 = vset.pattern.permute.xlu2 %v1407_v51  ;;  %1328 = vset.pattern.permute.xlu0 %v1422_v5  ;;  %v1688_v51 = vld [vmem:[%s2001_s3 + $0x18] sm:$0xff] }
 0x223   :  { %1316 = vset.pattern.permute.xlu1 %v1411_v12  ;;  %494 = vperm.xlu2 %1314, %v1625_v25   ;;  %v1732_v12 = vld [vmem:[%s2001_s3 + $0x48] sm:$0xff] }
 0x224   :  { %662 = vperm.xlu0 %1328, %v1625_v25   ;;  %518 = vperm.xlu1 %1316, %v1625_v25  }
 0x22b   :  { %1315 = vset.pattern.permute.xlu2 %v1409_v29  ;;  %v1431_v29 = vmov 20  }
 0x22c   :  { %1333 = vset.pattern.permute.xlu0 %v1423_v21  ;;  %1317 = vset.pattern.permute.xlu1 %v1410_v37  ;;  %v1725_v37 = vld [vmem:[%s2001_s3 + $0x40] sm:$0xff] }
 0x22d   :  { %506 = vperm.xlu2 %1315, %v1625_v25   ;;  %694 = vperm.xlu0 %1333, %v1611_v11  }
 0x22e   :  { %530 = vperm.xlu1 %1317, %v1625_v25  }
 0x235   :  { %1319 = vset.pattern.permute.xlu2 %v1412_v14  ;;  %1338 = vset.pattern.permute.xlu0 %v1424_v32 }
 0x236   :  { %1321 = vset.pattern.permute.xlu1 %v1414_v16  ;;  %554 = vperm.xlu2 %1319, %v1625_v25  }
 0x237   :  { %722 = vperm.xlu0 %1338, %v1625_v25   ;;  %578 = vperm.xlu1 %1321, %v1625_v25  }
 0x23b   :  { %v479_v0 = vpop.permute.xlu2 %478 }
 0x23c   :  { %v485_v46 = vmul.f32 %v479_v0, %v1668_v41 }
 0x23e   :  { %1320 = vset.pattern.permute.xlu2 %v1415_v17  ;;  %v1739_v17 = vld [vmem:[%s2001_s3 + $0x50] sm:$0xff] }
 0x23f   :  { %1343 = vset.pattern.permute.xlu0 %v1425_v33  ;;  %1322 = vset.pattern.permute.xlu1 %v1416_v18 }
 0x240   :  { %566 = vperm.xlu2 %1320, %v1625_v25   ;;  %754 = vperm.xlu0 %1343, %v1611_v11  }
 0x241   :  { %590 = vperm.xlu1 %1322, %v1625_v25  }
 0x245   :  { %v527_v34 = vpop.permute.xlu2 %526 }
 0x246   :  { %v533_v61 = vmul.f32 %v527_v34, %v1703_v13 }
 0x248   :  { %1324 = vset.pattern.permute.xlu2 %v1418_v24  ;;  %1348 = vset.pattern.permute.xlu0 %v1426_v35 }
 0x249   :  { %1326 = vset.pattern.permute.xlu1 %v1417_v19  ;;  %614 = vperm.xlu2 %1324, %v1625_v25  }
 0x24a   :  { %782 = vperm.xlu0 %1348, %v1625_v25   ;;  %638 = vperm.xlu1 %1326, %v1625_v25  }
 0x24e   :  { %v539_v36 = vpop.permute.xlu2 %538 }
 0x24f   :  { %v545_v1 = vmul.f32 %v539_v36, %v1709_v60 }
 0x251   :  { %1325 = vset.pattern.permute.xlu2 %v1420_v28 }
 0x252   :  { %1353 = vset.pattern.permute.xlu0 %v1427_v38  ;;  %1327 = vset.pattern.permute.xlu1 %v1421_v30 }
 0x253   :  { %626 = vperm.xlu2 %1325, %v1625_v25   ;;  %814 = vperm.xlu0 %1353, %v1611_v11   ;;  %v491_v40 = vpop.permute.xlu1 %490 }
 0x254   :  { %650 = vperm.xlu1 %1327, %v1625_v25   ;;  %v467_v43 = vpop.permute.xlu0 %466  ;;  %v497_v49 = vmul.f32 %v491_v40, %v1680_v45 }
 0x255   :  { %v473_v44 = vmul.f32 %v467_v43, %v1661_v39 }
 0x257   :  { %v475_v47 = vadd.f32 %v473_v44, %v1674_v42  ;;  %v1432_v44 = vmov 22  }
 0x258   :  { %v587_v48 = vpop.permute.xlu2 %586 }
 0x259   :  { %v487_v50 = vadd.f32 %v485_v46, %v475_v47  ;;  %v593_v24 = vmul.f32 %v587_v48, %v1739_v17  ;;  %v1768_v46 = vld [vmem:[%s2001_s3 + $0x70] sm:$0xff] }
 0x25b   :  { %1331 = vset.pattern.permute.xlu2 %v1428_v52  ;;  %1358 = vset.pattern.permute.xlu0 %v1429_v53  ;;  %v499_v54 = vadd.f32 %v497_v49, %v487_v50  ;;  %v1774_v50 = vld [vmem:[%s2001_s3 + $0x78] sm:$0xff] }
 0x25c   :  { %1329 = vset.pattern.permute.xlu1 %v1428_v52  ;;  %674 = vperm.xlu2 %1331, %v1625_v25   ;;  %v503_v55 = vpop.permute.xlu1 %502 }
 0x25d   :  { %842 = vperm.xlu0 %1358, %v1625_v25   ;;  %670 = vperm.xlu1 %1329, %v1611_v11   ;;  %v509_v57 = vmul.f32 %v503_v55, %v1688_v51  ;;  %v515_v58 = vpop.permute.xlu0 %514  ;;  %v1780_v55 = vld [vmem:[%s2001_s3 + $0x80] sm:$0xff] }
 0x25e   :  { %v521_v59 = vmul.f32 %v515_v58, %v1695_v56 }
 0x25f   :  { %v511_v20 = vadd.f32 %v509_v57, %v499_v54 }
 0x261   :  { %v523_v62 = vadd.f32 %v521_v59, %v511_v20  ;;  %v599_v63 = vpop.permute.xlu2 %598  ;;  %v1433_v59 = vmov 23  }
 0x262   :  { %v605_v30 = vmul.f32 %v599_v63, %v1745_v23 }
 0x263   :  { %v535_v2 = vadd.f32 %v533_v61, %v523_v62 }
 0x264   :  { %1332 = vset.pattern.permute.xlu2 %v1430_v4 }
 0x265   :  { %1330 = vset.pattern.permute.xlu1 %v1430_v4  ;;  %686 = vperm.xlu2 %1332, %v1625_v25   ;;  %v547_v7 = vadd.f32 %v545_v1, %v535_v2 }
 0x266   :  { %682 = vperm.xlu1 %1330, %v1611_v11   ;;  %v551_v8 = vpop.permute.xlu1 %550  ;;  %1361 = vset.pattern.permute.xlu0 %v1483_v3 }
 0x267   :  { %v557_v9 = vmul.f32 %v551_v8, %v1716_v6  ;;  %v575_v14 = vpop.permute.xlu0 %574 }
 0x268   :  { %v581_v18 = vmul.f32 %v575_v14, %v1732_v12 }
 0x269   :  { %v559_v31 = vadd.f32 %v557_v9, %v547_v7 }
 0x26b   :  { %v647_v10 = vpop.permute.xlu2 %646 }
 0x26c   :  { %v653_v57 = vmul.f32 %v647_v10, %v1774_v50 }
 0x26d   :  { %1335 = vset.pattern.permute.xlu2 %v1431_v29 }
 0x26e   :  { %1334 = vset.pattern.permute.xlu1 %v1423_v21  ;;  %706 = vperm.xlu2 %1335, %v1611_v11   ;;  %v1754_v21 = vld [vmem:[%s2001_s3 + $0x60] sm:$0xff] }
 0x26f   :  { %698 = vperm.xlu1 %1334, %v1625_v25   ;;  %v563_v15 = vpop.permute.xlu1 %562 }
 0x270   :  { %v569_v16 = vmul.f32 %v563_v15, %v1725_v37  ;;  %v635_v47 = vpop.permute.xlu0 %634 }
 0x271   :  { %v641_v52 = vmul.f32 %v635_v47, %v1768_v46  ;;  %v1436_v47 = vmov 28  }
 0x272   :  { %v571_v19 = vadd.f32 %v569_v16, %v559_v31  ;;  %v1434_v31 = vmov 25  }
 0x274   :  { %v583_v27 = vadd.f32 %v581_v18, %v571_v19  ;;  %v659_v28 = vpop.permute.xlu2 %658 }
 0x275   :  { %v665_v61 = vmul.f32 %v659_v28, %v1780_v55 }
 0x276   :  { %1337 = vset.pattern.permute.xlu2 %v1424_v32  ;;  %v595_v5 = vadd.f32 %v593_v24, %v583_v27  ;;  %v1762_v32 = vld [vmem:[%s2001_s3 + $0x68] sm:$0xff]  ;;  %v1435_v27 = vmov 27  }
 0x277   :  { %1336 = vset.pattern.permute.xlu1 %v1431_v29  ;;  %718 = vperm.xlu2 %1337, %v1611_v11  }
 0x278   :  { %710 = vperm.xlu1 %1336, %v1625_v25   ;;  %v607_v0 = vadd.f32 %v605_v30, %v595_v5 }
 0x279   :  { %v611_v34 = vpop.permute.xlu1 %610 }
 0x27a   :  { %v617_v36 = vmul.f32 %v611_v34, %v1754_v21  ;;  %v483_v1 = vpop.permute.xlu0 %482 }
 0x27b   :  { %v486_v7 = vmul.f32 %v483_v1, %v1668_v41 }
 0x27c   :  { %v619_v40 = vadd.f32 %v617_v36, %v607_v0 }
 0x27d   :  { %v495_v43 = vpop.permute.xlu2 %494 }
 0x27e   :  { %v498_v10 = vmul.f32 %v495_v43, %v1680_v45 }
 0x27f   :  { %1340 = vset.pattern.permute.xlu2 %v1432_v44 }
 0x280   :  { %1339 = vset.pattern.permute.xlu1 %v1432_v44  ;;  %734 = vperm.xlu2 %1340, %v1625_v25  }
 0x281   :  { %730 = vperm.xlu1 %1339, %v1611_v11  }
 0x282   :  { %v623_v48 = vpop.permute.xlu1 %622 }
 0x283   :  { %v629_v49 = vmul.f32 %v623_v48, %v1762_v32 }
 0x285   :  { %v631_v54 = vadd.f32 %v629_v49, %v619_v40 }
 0x287   :  { %v643_v58 = vadd.f32 %v641_v52, %v631_v54  ;;  %v507_v20 = vpop.permute.xlu2 %506  ;;  %v1437_v54 = vmov 30  }
 0x288   :  { %1342 = vset.pattern.permute.xlu2 %v1433_v59  ;;  %v510_v14 = vmul.f32 %v507_v20, %v1688_v51 }
 0x289   :  { %1341 = vset.pattern.permute.xlu1 %v1433_v59  ;;  %746 = vperm.xlu2 %1342, %v1625_v25   ;;  %v655_v62 = vadd.f32 %v653_v57, %v643_v58 }
 0x28a   :  { %742 = vperm.xlu1 %1341, %v1611_v11  }
 0x28b   :  { %v1786_v63 = vadd.f32 %v665_v61, %v655_v62 }
 0x28d   :  { %v471_v2 = vpop.permute.xlu1 %470 }
 0x28e   :  { %v474_v4 = vmul.f32 %v471_v2, %v1661_v39 }
 0x290   :  { %v476_v8 = vadd.f32 %v474_v4, %v1674_v42  ;;  %v555_v9 = vpop.permute.xlu2 %554 }
 0x291   :  { %1345 = vset.pattern.permute.xlu2 %v1434_v31 }
 0x292   :  { %v488_v29 = vadd.f32 %v486_v7, %v476_v8  ;;  %1344 = vset.pattern.permute.xlu1 %v1425_v33  ;;  %766 = vperm.xlu2 %1345, %v1611_v11   ;;  %v543_v33 = vpop.permute.xlu0 %542 }
 0x293   :  { %758 = vperm.xlu1 %1344, %v1625_v25   ;;  %v546_v51 = vmul.f32 %v543_v33, %v1709_v60 }
 0x294   :  { %v500_v15 = vadd.f32 %v498_v10, %v488_v29 }
 0x296   :  { %v512_v39 = vadd.f32 %v510_v14, %v500_v15  ;;  %v519_v16 = vpop.permute.xlu1 %518 }
 0x297   :  { %v522_v41 = vmul.f32 %v519_v16, %v1695_v56  ;;  %v558_v56 = vmul.f32 %v555_v9, %v1716_v6 }
 0x299   :  { %v524_v42 = vadd.f32 %v522_v41, %v512_v39 }
 0x29a   :  { %1347 = vset.pattern.permute.xlu2 %v1426_v35  ;;  %v567_v18 = vpop.permute.xlu2 %566  ;;  %v1805_v35 = vld [vmem:[%s2003_s5] sm:$0x3]  ;;  %v603_v48 = vpop.permute.xlu0 %602 }
 0x29b   :  { %1346 = vset.pattern.permute.xlu1 %v1434_v31  ;;  %778 = vperm.xlu2 %1347, %v1611_v11   ;;  %vm891_vm6 = vcmp.eq.s32.totalorder %v1805_v35, 0  ;;  %v570_v30 = vmul.f32 %v567_v18, %v1725_v37 }
 0x29c   :  { %770 = vperm.xlu1 %1346, %v1625_v25   ;;  %vm893_vm8 = vmand %vm891_vm6, %vm892_vm7 }
 0x29d   :  { %v894_v60 = vsel %vm893_vm8, %v1532_v26, 8 }
 0x29e   :  { %v1817_v0 = vsel %vm895_vm9, %v894_v60, 2147483647 }
 0x29f   :  { %v898_v34 = vshra.s32 %v1817_v0, 16 }
 0x2a0   :  { %v531_v45 = vpop.permute.xlu1 %530 }
 0x2a1   :  { %v534_v19 = vmul.f32 %v531_v45, %v1703_v13  ;;  %v1821_v43 = vcvt.s32.f32 %v898_v34 }
 0x2a2   :  { %v663_v4 = vpop.permute.xlu0 %662 }
 0x2a3   :  { %v536_v24 = vadd.f32 %v534_v19, %v524_v42  ;;  %1350 = vset.pattern.permute.xlu2 %v1435_v27  ;;  %v615_v28 = vpop.permute.xlu2 %614  ;;  %901 = vmin.xlane.f32.xlu0 %v1821_v43 }
 0x2a4   :  { %1349 = vset.pattern.permute.xlu1 %v1435_v27  ;;  %794 = vperm.xlu2 %1350, %v1625_v25   ;;  %v618_v20 = vmul.f32 %v615_v28, %v1754_v21  ;;  %v447_v27 = vld [vmem:[%s2001_s3 + $0x98] sm:$0xff] }
 0x2a5   :  { %v548_v13 = vadd.f32 %v546_v51, %v536_v24  ;;  %790 = vperm.xlu1 %1349, %v1611_v11  }
 0x2a7   :  { %v560_v5 = vadd.f32 %v558_v56, %v548_v13 }
 0x2a9   :  { %v572_v36 = vadd.f32 %v570_v30, %v560_v5  ;;  %v579_v40 = vpop.permute.xlu1 %578  ;;  %v448_v30 = vld [vmem:[%s2001_s3 + $0xa0] sm:$0xff] }
 0x2aa   :  { %v582_v6 = vmul.f32 %v579_v40, %v1732_v12  ;;  %v606_v12 = vmul.f32 %v603_v48, %v1745_v23  ;;  %v695_v18 = vpop.permute.xlu0 %694  ;;  %v451_v48 = vld [vmem:[%s2001_s3 + $0xb8] sm:$0xff] }
 0x2ab   :  { %v701_v13 = vmul.f32 %v695_v18, %v447_v27 }
 0x2ac   :  { %v584_v44 = vadd.f32 %v582_v6, %v572_v36  ;;  %1352 = vset.pattern.permute.xlu2 %v1436_v47 }
 0x2ad   :  { %1351 = vset.pattern.permute.xlu1 %v1436_v47  ;;  %806 = vperm.xlu2 %1352, %v1625_v25   ;;  %v627_v37 = vpop.permute.xlu2 %626 }
 0x2ae   :  { %802 = vperm.xlu1 %1351, %v1611_v11   ;;  %v630_v61 = vmul.f32 %v627_v37, %v1762_v32  ;;  %v445_v32 = vld [vmem:[%s2001_s3 + $0x88] sm:$0xff] }
 0x2b2   :  { %v723_v28 = vpop.permute.xlu0 %722 }
 0x2b3   :  { %v591_v49 = vpop.permute.xlu1 %590 }
 0x2b4   :  { %v594_v52 = vmul.f32 %v591_v49, %v1739_v17 }
 0x2b5   :  { %1355 = vset.pattern.permute.xlu2 %v1437_v54 }
 0x2b6   :  { %v596_v57 = vadd.f32 %v594_v52, %v584_v44  ;;  %1354 = vset.pattern.permute.xlu1 %v1427_v38  ;;  %826 = vperm.xlu2 %1355, %v1611_v11   ;;  %v675_v58 = vpop.permute.xlu2 %674  ;;  %v450_v44 = vld [vmem:[%s2001_s3 + $0xb0] sm:$0xff] }
 0x2b7   :  { %818 = vperm.xlu1 %1354, %v1625_v25   ;;  %v678_v8 = vmul.f32 %v675_v58, %v445_v32 }
 0x2b8   :  { %v608_v59 = vadd.f32 %v606_v12, %v596_v57 }
 0x2ba   :  { %v620_v62 = vadd.f32 %v618_v20, %v608_v59  ;;  %v755_v6 = vpop.permute.xlu0 %754  ;;  %v452_v59 = vld [vmem:[%s2001_s3 + $0xc0] sm:$0xff] }
 0x2bc   :  { %v632_v1 = vadd.f32 %v630_v61, %v620_v62  ;;  %v639_v17 = vpop.permute.xlu1 %638 }
 0x2bd   :  { %v642_v2 = vmul.f32 %v639_v17, %v1768_v46 }
 0x2be   :  { %1357 = vset.pattern.permute.xlu2 %v1429_v53  ;;  %v666_v53 = vmul.f32 %v663_v4, %v1780_v55 }
 0x2bf   :  { %v644_v23 = vadd.f32 %v642_v2, %v632_v1  ;;  %1356 = vset.pattern.permute.xlu1 %v1437_v54  ;;  %838 = vperm.xlu2 %1357, %v1611_v11   ;;  %v687_v38 = vpop.permute.xlu2 %686  ;;  %v446_v11 = vld [vmem:[%s2001_s3 + $0x90] sm:$0xff]  ;;  %v761_v1 = vmul.f32 %v755_v6, %v452_v59 }
 0x2c0   :  { %830 = vperm.xlu1 %1356, %v1625_v25   ;;  %v690_v31 = vmul.f32 %v687_v38, %v446_v11 }
 0x2c2   :  { %v783_v2 = vpop.permute.xlu0 %782 }
 0x2c6   :  { %v651_v7 = vpop.permute.xlu1 %650 }
 0x2c7   :  { %v654_v21 = vmul.f32 %v651_v7, %v1774_v50  ;;  %1360 = vset.pattern.permute.xlu2 %v1483_v3 }
 0x2c8   :  { %1359 = vset.pattern.permute.xlu1 %v1483_v3  ;;  %v707_v25 = vpop.permute.xlu2 %706 }
 0x2c9   :  { %v656_v46 = vadd.f32 %v654_v21, %v644_v23  ;;  %v713_v36 = vmul.f32 %v707_v25, %v448_v30  ;;  %v453_v23 = vld [vmem:[%s2001_s3 + $0xc8] sm:$0xff]  ;;  %v454_v25 = vld [vmem:[%s2001_s3 + $0xd0] sm:$0xff] }
 0x2cb   :  { %v668_v9 = vadd.f32 %v666_v53, %v656_v46 }
 0x2cd   :  { %v680_v50 = vadd.f32 %v678_v8, %v668_v9  ;;  %v455_v8 = vld [vmem:[%s2001_s3 + $0xd8] sm:$0xff] }
 0x2cf   :  { %v671_v10 = vpop.permute.xlu1 %670  ;;  %v692_v29 = vadd.f32 %v690_v31, %v680_v50 }
 0x2d0   :  { %v677_v19 = vmul.f32 %v671_v10, %v445_v32 }
 0x2d1   :  { %v719_v14 = vpop.permute.xlu2 %718 }
 0x2d2   :  { %v679_v24 = vadd.f32 %v677_v19, %v1786_v63  ;;  %v449_v63 = vld [vmem:[%s2001_s3 + $0xa8] sm:$0xff] }
 0x2d3   :  { %v725_v47 = vmul.f32 %v719_v14, %v449_v63  ;;  %v726_v38 = vmul.f32 %v723_v28, %v449_v63 }
 0x2d8   :  { %v683_v15 = vpop.permute.xlu1 %682 }
 0x2d9   :  { %v689_v51 = vmul.f32 %v683_v15, %v446_v11  ;;  %v457_v15 = vld [vmem:[%s2001_s3 + $0xe8] sm:$0xff] }
 0x2da   :  { %v735_v39 = vpop.permute.xlu2 %734 }
 0x2db   :  { %v691_v56 = vadd.f32 %v689_v51, %v679_v24  ;;  %v738_v46 = vmul.f32 %v735_v39, %v450_v44  ;;  %v815_v39 = vpop.permute.xlu0 %814 }
 0x2dd   :  { %v703_v34 = vadd.f32 %v701_v13, %v691_v56  ;;  %v459_v13 = vld [vmem:[%s2001_s3 + $0xf8] sm:$0xff] }
 0x2df   :  { %v715_v40 = vadd.f32 %v713_v36, %v703_v34 }
 0x2e1   :  { %v699_v16 = vpop.permute.xlu1 %698  ;;  %v727_v54 = vadd.f32 %v725_v47, %v715_v40 }
 0x2e2   :  { %v702_v52 = vmul.f32 %v699_v16, %v447_v27  ;;  %v456_v16 = vld [vmem:[%s2001_s3 + $0xe0] sm:$0xff] }
 0x2e3   :  { %v747_v41 = vpop.permute.xlu2 %746 }
 0x2e4   :  { %v704_v61 = vadd.f32 %v702_v52, %v692_v29  ;;  %v750_v10 = vmul.f32 %v747_v41, %v451_v48  ;;  %v458_v41 = vld [vmem:[%s2001_s3 + $0xf0] sm:$0xff] }
 0x2ea   :  { %v711_v3 = vpop.permute.xlu1 %710 }
 0x2eb   :  { %v714_v58 = vmul.f32 %v711_v3, %v448_v30 }
 0x2ec   :  { %v767_v42 = vpop.permute.xlu2 %766 }
 0x2ed   :  { %v716_v17 = vadd.f32 %v714_v58, %v704_v61  ;;  %v773_v32 = vmul.f32 %v767_v42, %v453_v23 }
 0x2ef   :  { %v728_v21 = vadd.f32 %v726_v38, %v716_v17 }
 0x2f1   :  { %v740_v31 = vadd.f32 %v738_v46, %v728_v21 }
 0x2f3   :  { %v731_v55 = vpop.permute.xlu1 %730  ;;  %v752_v42 = vadd.f32 %v750_v10, %v740_v31  ;;  %v1438_v31 = vmov 0.0  }
 0x2f4   :  { %v737_v37 = vmul.f32 %v731_v55, %v450_v44 }
 0x2f5   :  { %v779_v33 = vpop.permute.xlu2 %778 }
 0x2f6   :  { %v739_v20 = vadd.f32 %v737_v37, %v727_v54  ;;  %v785_v9 = vmul.f32 %v779_v33, %v454_v25  ;;  %v821_v33 = vmul.f32 %v815_v39, %v457_v15  ;;  %v857_v39 = vperm.slane %v1805_v35, 1 }
 0x2fc   :  { %v743_v45 = vpop.permute.xlu1 %742 }
 0x2fd   :  { %v749_v12 = vmul.f32 %v743_v45, %v451_v48 }
 0x2fe   :  { %v1854_v5 = vpop.permute.xlu2 %794 }
 0x2ff   :  { %v751_v62 = vadd.f32 %v749_v12, %v739_v20  ;;  %v798_v6 = vmul.f32 %v1854_v5, %v455_v8 }
 0x301   :  { %v763_v4 = vadd.f32 %v761_v1, %v751_v62  ;;  %v897_v62 = vand.u32 65535, %v1817_v0 }
 0x303   :  { %v775_v11 = vadd.f32 %v773_v32, %v763_v4  ;;  %v899_v17 = vcvt.s32.f32 %v897_v62 }
 0x305   :  { %v759_v60 = vpop.permute.xlu1 %758  ;;  %v787_v14 = vadd.f32 %v785_v9, %v775_v11 }
 0x306   :  { %v762_v29 = vmul.f32 %v759_v60, %v452_v59  ;;  %v786_v60 = vmul.f32 %v783_v2, %v454_v25 }
 0x307   :  { %v807_v57 = vpop.permute.xlu2 %806 }
 0x308   :  { %v764_v19 = vadd.f32 %v762_v29, %v752_v42  ;;  %v810_v37 = vmul.f32 %v807_v57, %v456_v16 }
 0x30e   :  { %v771_v49 = vpop.permute.xlu1 %770 }
 0x30f   :  { %v774_v55 = vmul.f32 %v771_v49, %v453_v23  ;;  %v843_v49 = vpop.permute.xlu0 %842 }
 0x310   :  { %v827_v53 = vpop.permute.xlu2 %826  ;;  %v846_v20 = vmul.f32 %v843_v49, %v459_v13 }
 0x311   :  { %v776_v27 = vadd.f32 %v774_v55, %v764_v19  ;;  %v833_v28 = vmul.f32 %v827_v53, %v458_v41 }
 0x313   :  { %v788_v36 = vadd.f32 %v786_v60, %v776_v27 }
 0x315   :  { %v800_v47 = vadd.f32 %v798_v6, %v788_v36 }
 0x317   :  { %v791_v7 = vpop.permute.xlu1 %790  ;;  %v812_v52 = vadd.f32 %v810_v37, %v800_v47  ;;  %v902_v1 = vpop.xlane.xlu0 %901 }
 0x318   :  { %v797_v50 = vmul.f32 %v791_v7, %v455_v8  ;;  %vm903_vm11 = vcmp.eq.f32.partialorder %v1821_v43, %v902_v1  ;;  %v908_v53 = vcvt.f32.s32 %v902_v1 }
 0x319   :  { %v839_v24 = vpop.permute.xlu2 %838  ;;  %v904_v57 = vsel %vm903_vm11, %v899_v17, inf }
 0x31a   :  { %v799_v18 = vadd.f32 %v797_v50, %v787_v14  ;;  %v845_v30 = vmul.f32 %v839_v24, %v459_v13  ;;  %v909_v11 = vshll.u32 %v908_v53, 16 }
 0x320   :  { %v803_v3 = vpop.permute.xlu1 %802 }
 0x321   :  { %v809_v45 = vmul.f32 %v803_v3, %v456_v16 }
 0x323   :  { %v811_v51 = vadd.f32 %v809_v45, %v799_v18 }
 0x325   :  { %v823_v56 = vadd.f32 %v821_v33, %v811_v51 }
 0x327   :  { %v835_v34 = vadd.f32 %v833_v28, %v823_v56 }
 0x329   :  { %v819_v40 = vpop.permute.xlu1 %818  ;;  %v1889_v63 = vadd.f32 %v845_v30, %v835_v34 }
 0x32a   :  { %v822_v48 = vmul.f32 %v819_v40, %v457_v15  ;;  %v850_v15 = vperm.slane %v1805_v35, 0 }
 0x32b   :  { %v914_v44 = vsel %vm870_vm10, %v1889_v63, -inf }
 0x32c   :  { %915 = vmax.xlane.f32.xlu1 %v914_v44  ;;  %v824_v12 = vadd.f32 %v822_v48, %v812_v52 }
 0x332   :  { %v831_v54 = vpop.permute.xlu1 %830 }
 0x333   :  { %v834_v58 = vmul.f32 %v831_v54, %v458_v41 }
 0x335   :  { %v836_v59 = vadd.f32 %v834_v58, %v824_v12 }
 0x337   :  { %v1894_v61 = vadd.f32 %v846_v20, %v836_v59 }
 0x339   :  { %v917_v5 = vsel %vm870_vm10, %v1894_v61, -inf }
 0x33a   :  { %918 = vmax.xlane.f32.xlu2 %v917_v5 }
 0x342   :  { %905 = vmin.xlane.f32.xlu2 %v904_v57 }
 0x39f   :  { %v916_v2 = vpop.xlane.xlu1 %915 }
 0x3a0   :  { %v920_v23 = vsub.f32 %v1889_v63, %v916_v2  ;;  %vm1003_vm1 = vcmp.eq.f32.partialorder %v1889_v63, %v916_v2 }
 0x3a1   :  { %v1239_v36 = vsel %vm1003_vm1, 1.0, %v1438_v31 }
 0x3a2   :  { %v922_v38 = vmul.f32 1.442695, %v920_v23 }
 0x3a4   :  { %1373 = vpow2.f32 %v922_v38 }
 0x3aa   :  { %v1374_v4 = vpop.eup %1373 }
 0x3ab   :  { %v926_v7 = vsel %vm870_vm10, %v1374_v4, 0.0 }
 0x3ac   :  { %927 = vadd.xlane.f32.xlu1 %v926_v7 }
 0x3ad   :  { %v919_v0 = vpop.xlane.xlu2 %918 }
 0x3ae   :  { %v921_v21 = vsub.f32 %v1894_v61, %v919_v0  ;;  %vm1004_vm2 = vcmp.eq.f32.partialorder %v1894_v61, %v919_v0 }
 0x3af   :  { %v1240_v40 = vsel %vm1004_vm2, 1.0, %v1438_v31 }
 0x3b0   :  { %v924_v32 = vmul.f32 1.442695, %v921_v21 }
 0x3b2   :  { %1375 = vpow2.f32 %v924_v32 }
 0x3b5   :  { %v906_v46 = vpop.xlane.xlu2 %905 }
 0x3b6   :  { %v907_v43 = vcvt.f32.s32 %v906_v46 }
 0x3b8   :  { %v1903_v25 = vpop.eup %1375  ;;  %v910_v8 = vadd.s32 %v909_v11, %v907_v43 }
 0x3b9   :  { %v929_v9 = vsel %vm870_vm10, %v1903_v25, 0.0 }
 0x3ba   :  { %vm911_vm12 = vcmp.lt.s32.totalorder %v1532_v26, %v910_v8  ;;  %930 = vadd.xlane.f32.xlu2 %v929_v9 }
 0x3bb   :  { %v1235_v50 = vsel %vm911_vm12, 1.0, %v1438_v31 }
 0x3bc   :  { %v973_v10 = vperm.slane %v1235_v50, 0  ;;  %v980_v29 = vperm.slane %v1235_v50, 1 }
 0x3be   :  { %v1362_v14 = vpack.i.bf16 %v980_v29, %v973_v10 }
 0x3c0   :  { %1363 = vperm.xlu0 %1361, %v1362_v14  }
 0x3c5   :  { %855 = vperm.xlu1 %1359, %v850_v15  }
 0x3c8   :  { %1369 = vset.pattern.permute.xlu0 %v1405_v22 }
 0x3cd   :  { %1367 = vset.pattern.permute.xlu1 %v1405_v22 }
 0x3d2   :  { %862 = vperm.xlu2 %1360, %v857_v39  }
 0x3da   :  { %1368 = vset.pattern.permute.xlu2 %v1405_v22 }
 0x41f   :  { %v928_v16 = vpop.xlane.xlu1 %927 }
 0x420   :  { %1377 = vrcp.f32 %v928_v16  ;;  %v943_v18 = vand.u32 2147483648, %v928_v16  ;;  %v941_v41 = vand.u32 2147483647, %v928_v16  ;;  %vm937_vm14 = vweird.f32 %v928_v16 }
 0x422   :  { %v944_v51 = vor.u32 1.1754944e-38, %v943_v18  ;;  %vm942_vm0 = vcmp.eq.f32.partialorder %v941_v41, 8.507059e+37 }
 0x426   :  { %v1378_v3 = vpop.eup %1377 }
 0x427   :  { %v933_v42 = vmul.f32 %v1378_v3, %v928_v16  ;;  %vm938_vm13 = vweird.f32 %v1378_v3 }
 0x428   :  { %vm939_vm15 = vmor %vm937_vm14, %vm938_vm13  ;;  %vm885_vm13 = vcmp.eq.s32.totalorder %v1532_v26, 0  ;;  %vm962_vm14 = vcmp.eq.s32.totalorder %v1805_v35, 16 }
 0x429   :  { %v934_v55 = vsub.f32 1.0, %v933_v42 }
 0x42b   :  { %v935_v45 = vmul.f32 %v1378_v3, %v934_v55 }
 0x42d   :  { %v936_v33 = vadd.f32 %v1378_v3, %v935_v45  ;;  %v931_v19 = vpop.xlane.xlu2 %930 }
 0x42e   :  { %1379 = vrcp.f32 %v931_v19  ;;  %v958_v22 = vand.u32 2147483648, %v931_v19  ;;  %vm952_vm3 = vweird.f32 %v931_v19  ;;  %v956_v6 = vand.u32 2147483647, %v931_v19 }
 0x42f   :  { %v940_v24 = vsel %vm939_vm15, %v1378_v3, %v936_v33  ;;  %vm1439_vm15 = vmmov 1  }
 0x430   :  { %v945_v27 = vsel %vm942_vm0, %v944_v51, %v940_v24  ;;  %v959_v44 = vor.u32 1.1754944e-38, %v958_v22  ;;  %vm957_vm12 = vcmp.eq.f32.partialorder %v956_v6, 8.507059e+37  ;;  %vm968_vm0 = vmxor %vm962_vm14, %vm1439_vm15 }
 0x431   :  { %v946_v28 = vmul.f32 %v1374_v4, %v945_v27  ;;  %vm969_vm1 = vmxor %vm891_vm6, %vm1439_vm15 }
 0x432   :  { %v1916_v56 = vpop.permute.xlu0 %1363  ;;  %vm970_vm2 = vmand %vm968_vm0, %vm969_vm1 }
 0x433   :  { %v1366_v13 = vunpack.i.h.bf16 %v1916_v56  ;;  %v1365_v60 = vunpack.i.l.bf16 %v1916_v56  ;;  %1381 = vlog2.f32 %v946_v28  ;;  %v1110_v30 = vsub.f32 1.0, %v946_v28 }
 0x434   :  { %v1380_v34 = vpop.eup %1379 }
 0x435   :  { %v948_v63 = vmul.f32 %v1380_v34, %v931_v19  ;;  %v1010_v47 = vmul.f32 %v1366_v13, %v1240_v40  ;;  %v987_v37 = vmul.f32 %v1365_v60, %v946_v28  ;;  %v863_v48 = vpop.permute.xlu2 %862  ;;  %vm953_vm4 = vweird.f32 %v1380_v34 }
 0x436   :  { %v1009_v49 = vmul.f32 %v1365_v60, %v1239_v36  ;;  %vm865_vm7 = vcmp.eq.s32.totalorder %v863_v48, %v1532_v26  ;;  %1383 = vlog2.f32 %v1110_v30  ;;  %vm954_vm11 = vmor %vm952_vm3, %vm953_vm4 }
 0x437   :  { %v949_v52 = vsub.f32 1.0, %v948_v63  ;;  %v1018_v54 = vsel %vm870_vm10, %v1010_v47, -inf  ;;  %v989_v12 = vsel %vm870_vm10, %v987_v37, -inf  ;;  %v1234_v58 = vsel %vm865_vm7, 1.0, %v1438_v31  ;;  %v856_v20 = vpop.permute.xlu1 %855  ;;  %vm963_vm3 = vmxor %vm891_vm6, %vm962_vm14 }
 0x438   :  { %v1019_v59 = vrot.slane %v1018_v54, 4  ;;  %v990_v61 = vrot.slane %v989_v12, 4  ;;  %v1011_v62 = vsel %vm870_vm10, %v1009_v49, -inf  ;;  %v878_v5 = vsel %vm870_vm10, %v1234_v58, -inf }
 0x439   :  { %v1382_v1 = vpop.eup %1381  ;;  %v950_v17 = vmul.f32 %v1380_v34, %v949_v52  ;;  %v1012_v57 = vrot.slane %v1011_v62, 4  ;;  %v879_v2 = vrot.slane %v878_v5, 4  ;;  %vm864_vm8 = vcmp.eq.s32.totalorder %v856_v20, %v1532_v26 }
 0x43a   :  { %v1020_v23 = vmax.f32 %v1018_v54, %v1019_v59  ;;  %v991_v38 = vmax.f32 %v989_v12, %v990_v61  ;;  %v1233_v4 = vsel %vm864_vm8, 1.0, %v1438_v31  ;;  %v1105_v7 = vmul.f32 0.6931472, %v1382_v1 }
 0x43b   :  { %v951_v0 = vadd.f32 %v1380_v34, %v950_v17  ;;  %v1013_v21 = vmax.f32 %v1011_v62, %v1012_v57  ;;  %v880_v32 = vmax.f32 %v878_v5, %v879_v2  ;;  %v871_v53 = vsel %vm870_vm10, %v1233_v4, -inf }
 0x43c   :  { %v1384_v46 = vpop.eup %1383  ;;  %v1021_v11 = vrot.slane %v1020_v23, 2  ;;  %v992_v43 = vrot.slane %v991_v38, 2  ;;  %v872_v8 = vrot.slane %v871_v53, 4  ;;  %v1108_v9 = vmax.f32 %v1105_v7, -100.0 }
 0x43d   :  { %v955_v50 = vsel %vm954_vm11, %v1380_v34, %v951_v0  ;;  %v1014_v10 = vrot.slane %v1013_v21, 2  ;;  %v881_v29 = vrot.slane %v880_v32, 2  ;;  %v1113_v41 = vmul.f32 0.6931472, %v1384_v46 }
 0x43e   :  { %v1022_v14 = vmax.f32 %v1020_v23, %v1021_v11  ;;  %v960_v15 = vsel %vm957_vm12, %v959_v44, %v955_v50  ;;  %v873_v39 = vmax.f32 %v871_v53, %v872_v8  ;;  %1121 = vperm.xlu1 %1367, %v1108_v9   ;;  %v993_v3 = vmax.f32 %v991_v38, %v992_v43 }
 0x43f   :  { %v961_v16 = vmul.f32 %v1903_v25, %v960_v15  ;;  %v1015_v42 = vmax.f32 %v1013_v21, %v1014_v10  ;;  %v882_v55 = vmax.f32 %v880_v32, %v881_v29  ;;  %v1116_v36 = vmax.f32 %v1113_v41, -100.0 }
 0x440   :  { %v1023_v18 = vrot.slane %v1022_v14, 1  ;;  %v874_v45 = vrot.slane %v873_v39, 2  ;;  %v994_v28 = vrot.slane %v993_v3, 1 }
 0x441   :  { %v988_v33 = vmul.f32 %v1366_v13, %v961_v16  ;;  %v1016_v19 = vrot.slane %v1015_v42, 1  ;;  %v883_v51 = vrot.slane %v882_v55, 1  ;;  %1385 = vlog2.f32 %v961_v16 }
 0x442   :  { %v1024_v24 = vmax.f32 %v1022_v14, %v1023_v18  ;;  %v875_v27 = vmax.f32 %v873_v39, %v874_v45  ;;  %v1111_v22 = vsub.f32 1.0, %v961_v16  ;;  %v995_v44 = vmax.f32 %v993_v3, %v994_v28 }
 0x443   :  { %v996_v56 = vsel %vm870_vm10, %v988_v33, -inf  ;;  %v1017_v60 = vmax.f32 %v1015_v42, %v1016_v19  ;;  %v884_v34 = vmax.f32 %v882_v55, %v883_v51  ;;  %vm1057_vm10 = vcmask 123904  }
 0x444   :  { %v997_v30 = vrot.slane %v996_v56, 4  ;;  %v876_v25 = vrot.slane %v875_v27, 1  ;;  %1387 = vlog2.f32 %v1111_v22  ;;  %v1036_v62 = vsub.f32 1.0, %v995_v44 }
 0x445   :  { %v1027_v13 = vsel %vm157_vm5, %v1024_v24, %v1017_v60  ;;  %1389 = vlog2.f32 %v995_v44  ;;  %v1237_v60 = vsel %vm891_vm6, 1.0, %v1438_v31 }
 0x446   :  { %v998_v40 = vmax.f32 %v996_v56, %v997_v30  ;;  %v877_v6 = vmax.f32 %v875_v27, %v876_v25  ;;  %1135 = vperm.xlu1 %1367, %v1116_v36   ;;  %v1029_v52 = vsel %vm885_vm13, 0.0, %v1027_v13  ;;  %1391 = vlog2.f32 %v1036_v62 }
 0x447   :  { %v1386_v63 = vpop.eup %1385  ;;  %v1152_v30 = vsel %vm895_vm9, %v1237_v60, 0.0  ;;  %v1238_v25 = vsel %vm970_vm2, 1.0, %v1438_v31  ;;  %vm1223_vm2 = vcmp.eq.s32.totalorder %v1532_v26, 3 }
 0x448   :  { %v999_v47 = vrot.slane %v998_v40, 2  ;;  %v1107_v37 = vmul.f32 0.6931472, %v1386_v63  ;;  %v888_v48 = vsel %vm157_vm5, %v884_v34, %v877_v6  ;;  %v1176_v36 = vsel %vm895_vm9, %v1238_v25, 0.0 }
 0x449   :  { %v890_v49 = vsel %vm885_vm13, 0.0, %v888_v48 }
 0x44a   :  { %v1000_v54 = vmax.f32 %v998_v40, %v999_v47  ;;  %v1109_v12 = vmax.f32 %v1107_v37, -100.0  ;;  %v1196_v58 = vmul.f32 %v1029_v52, %v890_v49  ;;  %v1200_v20 = vadd.f32 %v1029_v52, %v890_v49  ;;  %v1388_v59 = vpop.eup %1387 }
 0x44b   :  { %v1049_v61 = vsub.f32 1.0, %v890_v49  ;;  %v1070_v17 = vrot.slane %v890_v49, 1  ;;  %v1115_v4 = vmul.f32 0.6931472, %v1388_v59  ;;  %v1390_v32 = vpop.eup %1389  ;;  %v1073_v46 = vmul.f32 %v995_v44, %v890_v49 }
 0x44c   :  { %v1001_v5 = vrot.slane %v1000_v54, 1  ;;  %1124 = vperm.xlu2 %1368, %v1109_v12   ;;  %v1201_v1 = vsub.f32 %v1200_v20, %v1196_v58  ;;  %v1392_v50 = vpop.eup %1391  ;;  %v1031_v14 = vmul.f32 0.6931472, %v1390_v32  ;;  %v1197_v51 = vsel %vm1057_vm10, %v1196_v58, 0.0 }
 0x44d   :  { %v1089_v57 = vrot.slane %v1049_v61, 1  ;;  %v1092_v2 = vmul.f32 %v1049_v61, %v995_v44  ;;  %v1117_v53 = vmax.f32 %v1115_v4, -100.0  ;;  %v1039_v16 = vmul.f32 0.6931472, %v1392_v50 }
 0x44e   :  { %v1002_v23 = vmax.f32 %v1000_v54, %v1001_v5  ;;  %v1202_v38 = vsel %vm1057_vm10, %v1201_v1, 0.0  ;;  %v1034_v42 = vmax.f32 %v1031_v14, -100.0  ;;  %v1083_v34 = vsel %vm1057_vm10, %v890_v49, 0.0 }
 0x44f   :  { %1203 = vadd.xlane.f32.xlu0 %v1202_v38  ;;  %v1042_v41 = vmax.f32 %v1039_v16, -100.0  ;;  %v1236_v47 = vsel %vm963_vm3, 1.0, %v1438_v31  ;;  %vm1222_vm3 = vcmp.eq.s32.totalorder %v1532_v26, 2 }
 0x450   :  { %v1074_v7 = vmul.f32 %v1070_v17, %v1002_v23  ;;  %v1093_v0 = vmul.f32 %v1089_v57, %v1002_v23  ;;  %1393 = vlog2.f32 %v1002_v23  ;;  %v1037_v21 = vsub.f32 1.0, %v1002_v23 }
 0x451   :  { %v1131_v37 = vsub.f32 1.0, %v1236_v47 }
 0x452   :  { %v1077_v11 = vrot.slane %v1074_v7, 7  ;;  %v1096_v43 = vrot.slane %v1093_v0, 7  ;;  %1395 = vlog2.f32 %v1037_v21 }
 0x454   :  { %1138 = vperm.xlu2 %1368, %v1117_v53   ;;  %v1078_v8 = vsel %vm157_vm5, %v1077_v11, %v1073_v46  ;;  %v1097_v9 = vsel %vm157_vm5, %v1096_v43, %v1092_v2  ;;  %v1440_v53 = vmov 16.0  }
 0x455   :  { %v1080_v10 = vsel %vm1057_vm10, %v1078_v8, 0.0  ;;  %v1099_v29 = vsel %vm1057_vm10, %v1097_v9, 0.0 }
 0x456   :  { %v1394_v15 = vpop.eup %1393 }
 0x457   :  { %1081 = vadd.xlane.f32.xlu0 %v1080_v10  ;;  %v1033_v39 = vmul.f32 0.6931472, %v1394_v15 }
 0x458   :  { %v1396_v3 = vpop.eup %1395 }
 0x459   :  { %v1035_v55 = vmax.f32 %v1033_v39, -100.0  ;;  %v1041_v18 = vmul.f32 0.6931472, %v1396_v3 }
 0x45b   :  { %v1046_v45 = vsel %vm157_vm5, %v1035_v55, %v1034_v42  ;;  %v1043_v33 = vmax.f32 %v1041_v18, -100.0 }
 0x45c   :  { %v1048_v19 = vmul.f32 %v1046_v45, %v890_v49 }
 0x45d   :  { %v1052_v24 = vsel %vm157_vm5, %v1043_v33, %v1042_v41 }
 0x45e   :  { %v1054_v27 = vmul.f32 %v1052_v24, %v1049_v61 }
 0x45f   :  { %1198 = vadd.xlane.f32.xlu0 %v1197_v51 }
 0x460   :  { %v1055_v22 = vadd.f32 %v1054_v27, %v1048_v19 }
 0x462   :  { %v1056_v28 = vsub.f32 0.0, %v1055_v22 }
 0x464   :  { %v1058_v56 = vsel %vm1057_vm10, %v1056_v28, 0.0 }
 0x470   :  { %1153 = vadd.xlane.f32.xlu1 %v1152_v30 }
 0x478   :  { %1084 = vadd.xlane.f32.xlu1 %v1083_v34 }
 0x47d   :  { %1177 = vadd.xlane.f32.xlu2 %v1176_v36 }
 0x4a6   :  { %v1125_v40 = vpop.permute.xlu2 %1124 }
 0x4a7   :  { %v1127_v44 = vperm.slane %v1125_v40, %v1532_v26 }
 0x4ae   :  { %v1139_v63 = vpop.permute.xlu2 %1138 }
 0x4af   :  { %v1141_v49 = vperm.slane %v1139_v63, %v1532_v26 }
 0x4b0   :  { %v1122_v6 = vpop.permute.xlu1 %1121 }
 0x4b1   :  { %v1126_v13 = vperm.slane %v1122_v6, %v1532_v26 }
 0x4b3   :  { %v1128_v52 = vsel %vm157_vm5, %v1127_v44, %v1126_v13 }
 0x4b4   :  { %v1130_v58 = vmul.f32 %v1236_v47, %v1128_v52 }
 0x4b8   :  { %v1136_v48 = vpop.permute.xlu1 %1135 }
 0x4b9   :  { %v1140_v54 = vperm.slane %v1136_v48, %v1532_v26 }
 0x4bb   :  { %v1142_v12 = vsel %vm157_vm5, %v1141_v49, %v1140_v54 }
 0x4bc   :  { %v1144_v35 = vmul.f32 %v1142_v12, %v1131_v37 }
 0x4be   :  { %v1145_v20 = vadd.f32 %v1144_v35, %v1130_v58 }
 0x4c0   :  { %v1146_v59 = vsub.f32 0.0, %v1145_v20 }
 0x4c2   :  { %v1171_v61 = vmul.f32 %v1238_v25, %v1146_v59  ;;  %v1147_v62 = vmul.f32 %v1237_v60, %v1146_v59  ;;  %v1204_v17 = vpop.xlane.xlu0 %1203 }
 0x4c3   :  { %v1205_v38 = vadd.f32 1e-06, %v1204_v17 }
 0x4c4   :  { %v1172_v5 = vsel %vm895_vm9, %v1171_v61, 0.0  ;;  %v1148_v31 = vsel %vm895_vm9, %v1147_v62, 0.0 }
 0x4c5   :  { %1173 = vadd.xlane.f32.xlu2 %v1172_v5  ;;  %1149 = vadd.xlane.f32.xlu1 %v1148_v31  ;;  %v1217_v24 = vand.u32 2147483648, %v1205_v38  ;;  %vm1211_vm12 = vweird.f32 %v1205_v38  ;;  %v1215_v27 = vand.u32 2147483647, %v1205_v38 }
 0x4c7   :  { %v1218_v63 = vor.u32 1.1754944e-38, %v1217_v24  ;;  %vm1216_vm0 = vcmp.eq.f32.partialorder %v1215_v27, 8.507059e+37 }
 0x4ca   :  { %v1082_v3 = vpop.xlane.xlu0 %1081 }
 0x4cd   :  { %1100 = vadd.xlane.f32.xlu2 %v1099_v29  ;;  %1059 = vadd.xlane.f32.xlu1 %v1058_v56 }
 0x4d2   :  { %v1199_v12 = vpop.xlane.xlu0 %1198 }
 0x4e3   :  { %v1154_v57 = vpop.xlane.xlu1 %1153 }
 0x4e4   :  { %v1155_v2 = vadd.f32 1e-06, %v1154_v57 }
 0x4e6   :  { %1397 = vrcp.f32 %v1155_v2  ;;  %vm1161_vm9 = vweird.f32 %v1155_v2  ;;  %v1167_v16 = vand.u32 2147483648, %v1155_v2  ;;  %v1165_v41 = vand.u32 2147483647, %v1155_v2 }
 0x4e8   :  { %v1168_v28 = vor.u32 1.1754944e-38, %v1167_v16  ;;  %vm1166_vm15 = vcmp.eq.f32.partialorder %v1165_v41, 8.507059e+37 }
 0x4eb   :  { %v1085_v50 = vpop.xlane.xlu1 %1084 }
 0x4ec   :  { %v1398_v4 = vpop.eup %1397  ;;  %v1086_v52 = vsub.f32 %v1082_v3, %v1085_v50 }
 0x4ed   :  { %v1157_v21 = vmul.f32 %v1398_v4, %v1155_v2  ;;  %vm1162_vm4 = vweird.f32 %v1398_v4 }
 0x4ee   :  { %vm1976_vm11 = vmor %vm1161_vm9, %vm1162_vm4  ;;  %v1087_v59 = vand.u32 2147483647, %v1086_v52 }
 0x4ef   :  { %v1158_v11 = vsub.f32 1.0, %v1157_v21 }
 0x4f0   :  { %v1178_v1 = vpop.xlane.xlu2 %1177 }
 0x4f1   :  { %v1179_v23 = vadd.f32 1e-06, %v1178_v1  ;;  %v1159_v29 = vmul.f32 %v1398_v4, %v1158_v11 }
 0x4f3   :  { %1399 = vrcp.f32 %v1179_v23  ;;  %vm1185_vm5 = vweird.f32 %v1179_v23  ;;  %v1191_v39 = vand.u32 2147483648, %v1179_v23  ;;  %v1189_v18 = vand.u32 2147483647, %v1179_v23 }
 0x4f4   :  { %1401 = vrcp.f32 %v1205_v38  ;;  %v1160_v45 = vadd.f32 %v1398_v4, %v1159_v29 }
 0x4f5   :  { %1403 = vrcp.f32 %v1440_v53  ;;  %v1192_v22 = vor.u32 1.1754944e-38, %v1191_v39  ;;  %vm1190_vm14 = vcmp.eq.f32.partialorder %v1189_v18, 8.507059e+37 }
 0x4f6   :  { %v1164_v34 = vsel %vm1976_vm11, %v1398_v4, %v1160_v45 }
 0x4f7   :  { %v1169_v47 = vsel %vm1166_vm15, %v1168_v28, %v1164_v34 }
 0x4f9   :  { %v1400_v7 = vpop.eup %1399 }
 0x4fa   :  { %v1402_v0 = vpop.eup %1401  ;;  %v1181_v32 = vmul.f32 %v1400_v7, %v1179_v23  ;;  %vm1186_vm6 = vweird.f32 %v1400_v7 }
 0x4fb   :  { %v1207_v46 = vmul.f32 %v1402_v0, %v1205_v38  ;;  %v1404_v9 = vpop.eup %1403  ;;  %vm1972_vm7 = vmor %vm1185_vm5, %vm1186_vm6  ;;  %vm1212_vm8 = vweird.f32 %v1402_v0  ;;  %vm1221_vm5 = vcmp.eq.s32.totalorder %v1532_v26, 1 }
 0x4fc   :  { %v1182_v43 = vsub.f32 1.0, %v1181_v32  ;;  %v1062_v15 = vmul.f32 16.0, %v1404_v9  ;;  %vm1980_vm10 = vmor %vm1211_vm12, %vm1212_vm8  ;;  %vm1066_vm1 = vweird.f32 %v1404_v9 }
 0x4fd   :  { %v1208_v8 = vsub.f32 1.0, %v1207_v46 }
 0x4fe   :  { %v1183_v10 = vmul.f32 %v1400_v7, %v1182_v43  ;;  %v1063_v51 = vsub.f32 1.0, %v1062_v15 }
 0x4ff   :  { %v1209_v14 = vmul.f32 %v1402_v0, %v1208_v8 }
 0x500   :  { %v1184_v42 = vadd.f32 %v1400_v7, %v1183_v10  ;;  %v1064_v13 = vmul.f32 %v1404_v9, %v1063_v51 }
 0x501   :  { %v1210_v33 = vadd.f32 %v1402_v0, %v1209_v14 }
 0x502   :  { %v1188_v60 = vsel %vm1972_vm7, %v1400_v7, %v1184_v42  ;;  %v1065_v54 = vadd.f32 %v1404_v9, %v1064_v13 }
 0x503   :  { %v1214_v36 = vsel %vm1980_vm10, %v1402_v0, %v1210_v33  ;;  %v1193_v44 = vsel %vm1190_vm14, %v1192_v22, %v1188_v60 }
 0x504   :  { %v1219_v37 = vsel %vm1216_vm0, %v1218_v63, %v1214_v36  ;;  %v1067_v62 = vsel %vm1066_vm1, %v1404_v9, %v1065_v54 }
 0x505   :  { %v1220_v58 = vmul.f32 %v1219_v37, %v1199_v12 }
 0x507   :  { %v1224_v31 = vsel %vm1223_vm2, %v1220_v58, 0.0 }
 0x538   :  { %v1174_v30 = vpop.xlane.xlu2 %1173  ;;  %v1150_v25 = vpop.xlane.xlu1 %1149 }
 0x539   :  { %v1175_v40 = vmul.f32 0.5, %v1174_v30  ;;  %v1151_v6 = vmul.f32 0.5, %v1150_v25 }
 0x53b   :  { %v1194_v48 = vmul.f32 %v1193_v44, %v1175_v40  ;;  %v1170_v49 = vmul.f32 %v1169_v47, %v1151_v6 }
 0x53d   :  { %v1195_v35 = vadd.f32 %v1194_v48, %v1170_v49 }
 0x53f   :  { %v1225_v17 = vsel %vm1222_vm3, %v1195_v35, %v1224_v31 }
 0x540   :  { %v1101_v20 = vpop.xlane.xlu2 %1100  ;;  %v1060_v5 = vpop.xlane.xlu1 %1059 }
 0x541   :  { %v1102_v61 = vand.u32 2147483647, %v1101_v20  ;;  %v1068_v57 = vmul.f32 %v1067_v62, %v1060_v5 }
 0x543   :  { %v1103_v1 = vadd.f32 %v1102_v61, %v1087_v59 }
 0x545   :  { %v1226_v2 = vsel %vm1221_vm5, %v1103_v1, %v1225_v17 }
 0x546   :  { %v1227_v23 = vsel %vm885_vm13, %v1068_v57, %v1226_v2 }
 0x547   :  { %1228 = vst [vmem:[%s2004_s6] sm:$0x3] %v1227_v23 }

</bundles_post_ra>
